<compile_context>
chip_gen: v5e
topology: v5e:2x2
jax: 0.10.0
libtpu: 0.0.40
codegen_flags: <defaults>
</compile_context>

<pallas_src>
from functools import partial

import numpy as np
import jax
import jax.numpy as jnp
from jax.experimental import pallas as pl
from jax.experimental.pallas import tpu as pltpu


_VMEM_LIMIT_BYTES = 32 * 1024 * 1024   # explicit scoped-VMEM cap; fits v5e/v6e/v7x


# ------------------------------ helpers --------------------------------------

def _round_up(x, m):
    return ((x + m - 1) // m) * m


def _choose_tile(dim, pref, align):
    """Full-dim block if small, else the largest `align`-multiple divisor
    <= pref (no padding); padding up to a pref multiple only as a last resort."""
    if dim <= pref:
        return dim, dim
    for t in range(pref - pref % align, align - 1, -align):
        if dim % t == 0:
            return t, dim
    return pref, _round_up(dim, pref)


def _choose_token_tile(H, W, target=512):
    """Token-tile size that is a whole number of rows in every group and
    divides every group's token count (so no tile straddles a group)."""
    base = 2 * W                   # widest group row (2H x 2W group)
    n = (H * W) // 4               # smallest group size
    assert n % base == 0, "need H % 8 == 0"
    r_max = n // base              # == H // 8
    r = 1
    for cand in range(r_max, 0, -1):
        if r_max % cand == 0 and base * cand <= target:
            r = cand
            break
    t_blk = base * r
    assert t_blk % 8 == 0, "need (2*W) % 8 == 0 (i.e. W % 4 == 0)"
    return t_blk


def _build_metadata(B, H, W, t_blk):
    """Host/trace-time constants: per-token 3x3 tap validity masks (zero
    padding of Conv2d) and per-tile group row widths."""
    groups = ((2 * H, 2 * W), (H, W), (H // 2, W // 2))
    mask_parts, ws_parts = [], []
    for Hs, Ws in groups:
        T = Hs * Ws
        t = np.arange(T)
        row, col = t // Ws, t % Ws
        m = np.zeros((T, 9), np.float32)
        k = 0
        for dy in (-1, 0, 1):
            for dx in (-1, 0, 1):
                ok = ((row + dy >= 0) & (row + dy < Hs) &
                      (col + dx >= 0) & (col + dx < Ws))
                m[:, k] = ok
                k += 1
        mask_parts.append(m)
        ws_parts.append(np.full(T // t_blk, Ws, np.int32))
    mask = np.tile(np.concatenate(mask_parts, axis=0), (B, 1))   # (B*N, 9)
    ws = np.tile(np.concatenate(ws_parts, axis=0), B)            # (B*N/t_blk,)
    return jnp.asarray(mask), jnp.asarray(ws)


# ------------------------------ fc1 matmul ------------------------------------

def _fc1_kernel_f32(x_ref, w_ref, b_ref, o_ref):
    # f32 output: accumulate directly into the resident output block
    # (bias written at k == 0) -- no scratch, no final copy/astype.
    @pl.when(pl.program_id(2) == 0)
    def _init():
        o_ref[...] = jnp.broadcast_to(b_ref[...].astype(o_ref.dtype),
                                      o_ref.shape)

    o_ref[...] += jnp.dot(x_ref[...], w_ref[...],
                          preferred_element_type=jnp.float32)


def _fc1_kernel_acc(x_ref, w_ref, b_ref, o_ref, acc_ref):
    # low-precision output dtype: keep an f32 VMEM accumulator.
    @pl.when(pl.program_id(2) == 0)
    def _init():
        acc_ref[...] = jnp.broadcast_to(b_ref[...].astype(jnp.float32),
                                        acc_ref.shape)

    acc_ref[...] += jnp.dot(x_ref[...], w_ref[...],
                            preferred_element_type=jnp.float32)

    @pl.when(pl.program_id(2) == pl.num_programs(2) - 1)
    def _fin():
        o_ref[...] = acc_ref[...].astype(o_ref.dtype)


def _fc1_into_padded(x2d, w, b, *, pad_rows_needed,
                     tm_pref=512, tn_pref=512, tk_pref=1024):
    """(M, K) @ (K, N) + b, written at row offset PAD into a
    (PAD + Mp + PAD, N) buffer (PAD = round_up(pad_rows_needed, tm)).
    Returns (buffer, PAD).  Pad rows are never written (halo slack only)."""
    M, K = x2d.shape
    Kw, N = w.shape
    assert Kw == K and N % 128 == 0

    tm, Mp = _choose_tile(M, tm_pref, 8)
    tn, Np = _choose_tile(N, tn_pref, 128)
    assert Np == N
    if K <= tk_pref:                       # full-K block: no activation pad
        tk, Kp = K, K
    else:
        tk, Kp = _choose_tile(K, tk_pref, 128)

    xp = x2d
    if Mp != M or Kp != K:                 # rare fallback only
        xp = jnp.pad(x2d, ((0, Mp - M), (0, Kp - K)))
    wp = w if Kp == K else jnp.pad(w, ((0, Kp - K), (0, 0)))
    b2d = b.reshape(1, N)

    pad = _round_up(max(pad_rows_needed, 1), tm)
    rows = pad + Mp + pad
    off_blocks = pad // tm

    use_f32 = (x2d.dtype == jnp.float32)
    kernel = _fc1_kernel_f32 if use_f32 else _fc1_kernel_acc
    scratch = [] if use_f32 else [pltpu.VMEM((tm, tn), jnp.float32)]

    out = pl.pallas_call(
        kernel,
        out_shape=jax.ShapeDtypeStruct((rows, N), x2d.dtype),
        grid_spec=pltpu.PrefetchScalarGridSpec(
            num_scalar_prefetch=0,
            grid=(Mp // tm, N // tn, Kp // tk),
            in_specs=[
                pl.BlockSpec((tm, tk), lambda i, j, k: (i, k)),
                pl.BlockSpec((tk, tn), lambda i, j, k: (k, j)),
                pl.BlockSpec((1, tn), lambda i, j, k: (0, j)),
            ],
            out_specs=pl.BlockSpec((tm, tn),
                                   lambda i, j, k: (i + off_blocks, j)),
            scratch_shapes=scratch,
        ),
        compiler_params=pltpu.CompilerParams(
            dimension_semantics=("parallel", "parallel", "arbitrary"),
            vmem_limit_bytes=_VMEM_LIMIT_BYTES),
    )(xp, wp, b2d)
    return out, pad


# ---------------- fused DWConv(3x3) + bias + GELU + fc2 -----------------------

def _dwconv_gelu_fc2_kernel(ws_ref,                       # SMEM (tiles,) int32
                            mask_ref, wd_ref, bd_ref, w2_ref, b2_ref,
                            h_hbm,                        # ANY: (rows, Cp) hidden
                            o_ref,                        # (t_blk, Coutp)
                            hbuf, sem,                    # scratch
                            *, t_blk, t_in, halo, pad):
    i = pl.program_id(0)
    nt = pl.num_programs(0)

    def issue(step, slot):
        start = pad - halo + step * t_blk
        pltpu.make_async_copy(h_hbm.at[pl.ds(start, t_in), :],
                              hbuf.at[slot], sem.at[slot]).start()

    @pl.when(i == 0)
    def _prime():
        issue(0, 0)

    @pl.when(i + 1 < nt)
    def _prefetch_next():
        issue(i + 1, (i + 1) % 2)

    slot = i % 2
    pltpu.make_async_copy(h_hbm.at[pl.ds(0, t_in), :],
                          hbuf.at[slot], sem.at[slot]).wait()

    hwin = hbuf.at[slot]                       # (t_in, Cp) halo window in VMEM
    ws = ws_ref[i]                             # row width of this tile's group

    # depthwise 3x3: nine offset loads out of the halo window (no rolls),
    # borders masked with the precomputed zero-padding table.
    acc = jnp.broadcast_to(bd_ref[...].astype(jnp.float32),
                           (t_blk, bd_ref.shape[1]))
    k = 0
    for dy in (-1, 0, 1):
        for dx in (-1, 0, 1):
            start = halo + dy * ws + dx
            tap = hwin[pl.ds(start, t_blk), :].astype(jnp.float32)
            wk = wd_ref[k:k + 1, :].astype(jnp.float32)       # (1, Cp)
            if dy == 0 and dx == 0:
                acc = acc + tap * wk                          # center: no mask
            else:
                mk = mask_ref[:, k:k + 1]                     # (t_blk, 1)
                acc = acc + jnp.where(mk > 0.5, tap, 0.0) * wk
            k += 1

    # exact (erf) GELU -- matches torch.nn.GELU default.
    act = 0.5 * acc * (1.0 + jax.lax.erf(acc * 0.7071067811865476))

    out = jnp.dot(act.astype(w2_ref.dtype), w2_ref[...],
                  preferred_element_type=jnp.float32)
    o_ref[...] = (out + b2_ref[...].astype(jnp.float32)).astype(o_ref.dtype)


def _dwconv_gelu_fc2(h_padded, pad, mask, ws_arr, wd9, bd2, w2p, b2p,
                     *, t_blk, halo, out_dtype):
    rows, cp = h_padded.shape
    coutp = w2p.shape[1]
    num_tiles = int(ws_arr.shape[0])
    bn = num_tiles * t_blk
    t_in = t_blk + 2 * halo

    kern = partial(_dwconv_gelu_fc2_kernel,
                   t_blk=t_blk, t_in=t_in, halo=halo, pad=pad)
    return pl.pallas_call(
        kern,
        out_shape=jax.ShapeDtypeStruct((bn, coutp), out_dtype),
        grid_spec=pltpu.PrefetchScalarGridSpec(
            num_scalar_prefetch=1,                 # ws_arr -> SMEM
            grid=(num_tiles,),
            in_specs=[
                pl.BlockSpec((t_blk, 9), lambda i, ws: (i, 0)),     # tap masks
                pl.BlockSpec((9, cp), lambda i, ws: (0, 0)),        # dw taps
                pl.BlockSpec((1, cp), lambda i, ws: (0, 0)),        # dw bias
                pl.BlockSpec((cp, coutp), lambda i, ws: (0, 0)),    # W2
                pl.BlockSpec((1, coutp), lambda i, ws: (0, 0)),     # b2
                pl.BlockSpec(memory_space=pl.ANY),                  # hidden (HBM)
            ],
            out_specs=pl.BlockSpec((t_blk, coutp), lambda i, ws: (i, 0)),
            scratch_shapes=[
                pltpu.VMEM((2, t_in, cp), h_padded.dtype),          # halo dbl-buf
                pltpu.SemaphoreType.DMA((2,)),
            ],
        ),
        # "arbitrary": the manual double-buffer primes its first DMA at i == 0,
        # which requires a strictly sequential grid walk.
        compiler_params=pltpu.CompilerParams(
            dimension_semantics=("arbitrary",),
            vmem_limit_bytes=_VMEM_LIMIT_BYTES),
    )(ws_arr, mask, wd9, bd2, w2p, b2p, h_padded)


# -------------------------------- ConvFFN -------------------------------------

@partial(jax.jit, static_argnums=(2, 3))
def conv_ffn_forward(x, params, H, W):
    """ConvFFN.forward.  x: (B, N, C_in) with N = 21 * (H*W // 4)."""
    w1, b1, wd, bd, w2, b2 = params
    B, N, Cin = x.shape
    n = (H * W) // 4
    assert H % 8 == 0 and W % 4 == 0, "row-tiled dwconv needs H%8==0, W%4==0"
    assert N == 21 * n, "token count must be 21 * (H*W//4)"

    hid = w1.shape[1]
    out_f = w2.shape[1]
    cp = _round_up(hid, 128)           # lane-dense hidden width
    coutp = _round_up(out_f, 128)      # lane-dense fc2 output width

    # one-time parameter padding; padded channels stay exactly zero end-to-end.
    pc = cp - hid
    w1p = jnp.pad(w1, ((0, 0), (0, pc))) if pc else w1
    b1p = jnp.pad(b1, (0, pc)) if pc else b1
    wd9 = wd.reshape(9, hid)
    wd9 = jnp.pad(wd9, ((0, 0), (0, pc))) if pc else wd9
    bd2 = (jnp.pad(bd, (0, pc)) if pc else bd).reshape(1, cp)
    w2p = jnp.pad(w2, ((0, pc), (0, coutp - out_f)))
    b2p = jnp.pad(b2, (0, coutp - out_f)).reshape(1, coutp)

    t_blk = _choose_token_tile(H, W)
    halo = _round_up(2 * W + 1, 8)                 # >= widest row + 1
    mask, ws_arr = _build_metadata(B, H, W, t_blk)

    # fc1, written straight into the token-padded hidden buffer.
    h_padded, pad = _fc1_into_padded(x.reshape(B * N, Cin), w1p, b1p,
                                     pad_rows_needed=halo)

    # fused dwconv + bias + GELU + fc2 over all three groups, one call.
    out = _dwconv_gelu_fc2(h_padded, pad, mask, ws_arr, wd9, bd2, w2p, b2p,
                           t_blk=t_blk, halo=halo, out_dtype=x.dtype)

    # dropout(p=0.0) is the identity.
    if coutp != out_f:
        out = out[:, :out_f]
    return out.reshape(B, N, out_f)


# --------------------------- pure-JAX reference -------------------------------

def _ref_forward(x, params, H, W):
    w1, b1, wd, bd, w2, b2 = params
    B, N, _ = x.shape
    n = N // 21
    hid = w1.shape[1]
    h = jnp.dot(x, w1, precision=jax.lax.Precision.HIGHEST) + b1

    def dw(tokens, Hs, Ws):
        img = tokens.reshape(B, Hs, Ws, hid)
        out = jax.lax.conv_general_dilated(
            img, wd.reshape(3, 3, 1, hid),
            window_strides=(1, 1), padding="SAME",
            dimension_numbers=("NHWC", "HWIO", "NHWC"),
            feature_group_count=hid,
            precision=jax.lax.Precision.HIGHEST) + bd
        return out.reshape(B, Hs * Ws, hid)

    y = jnp.concatenate([dw(h[:, :16 * n], 2 * H, 2 * W),
                         dw(h[:, 16 * n:20 * n], H, W),
                         dw(h[:, 20 * n:], H // 2, W // 2)], axis=1)
    y = 0.5 * y * (1.0 + jax.lax.erf(y / jnp.sqrt(2.0)))
    return jnp.dot(y, w2, precision=jax.lax.Precision.HIGHEST) + b2


# ---------------------------------- main ---------------------------------------

if __name__ == "__main__":
    B = 2
    H = W = 8                      # x2 group is (H, W); x1 (2H, 2W); x3 (H/2, W/2)
    n = (H * W) // 4               # 16
    N = 21 * n                     # 336 tokens
    in_features = 32
    hidden_features = 32
    out_features = 32

    key = jax.random.PRNGKey(0)
    kx, k1, k2, k3, k4, k5, k6 = jax.random.split(key, 7)

    # PyTorch Linear weight is (out, in); we store (in, out) so the kernel
    # computes x @ W + b with identical semantics.  Depthwise taps are stored
    # as (3, 3, hidden).
    w1 = jax.random.normal(k1, (in_features, hidden_features), jnp.float32) * 0.05
    b1 = jax.random.normal(k2, (hidden_features,), jnp.float32) * 0.05
    wd = jax.random.normal(k3, (3, 3, hidden_features), jnp.float32) * 0.1
    bd = jax.random.normal(k4, (hidden_features,), jnp.float32) * 0.05
    w2 = jax.random.normal(k5, (hidden_features, out_features), jnp.float32) * 0.05
    b2 = jax.random.normal(k6, (out_features,), jnp.float32) * 0.05
    params = (w1, b1, wd, bd, w2, b2)

    x = jax.random.normal(kx, (B, N, in_features), jnp.float32)

    out = jax.block_until_ready(conv_ffn_forward(x, params, H, W))
    ref = jax.block_until_ready(_ref_forward(x, params, H, W))

    assert out.shape == (B, N, out_features)
    assert jnp.allclose(out, ref, rtol=1e-2, atol=1e-2), "mismatch vs reference"

    print("KERNEL_OK")
</pallas_src>

<mosaic_0001>
module attributes {stable_mosaic.version = 11 : i64} {
  func.func @_fc1_kernel_f32(%arg0: i32, %arg1: i32, %arg2: i32, %arg3: memref<336x32xf32, #tpu.memory_space<vmem>>, %arg4: memref<32x128xf32, #tpu.memory_space<vmem>>, %arg5: memref<1x128xf32, #tpu.memory_space<vmem>>, %arg6: memref<336x128xf32, #tpu.memory_space<vmem>>) attributes {dimension_semantics = [#tpu.dimension_semantics<parallel>, #tpu.dimension_semantics<parallel>, #tpu.dimension_semantics<arbitrary>], iteration_bounds = array<i64: 2, 1, 1>, scalar_prefetch = 0 : i64, scratch_operands = 0 : i64, tpu.core_type = #tpu.core_type<tc>, window_params = [{transform_indices = @transform_0, window_bounds = array<i64: 336, 32>}, {transform_indices = @transform_1, window_bounds = array<i64: 32, 128>}, {transform_indices = @transform_2, window_bounds = array<i64: 1, 128>}, {transform_indices = @transform_3, window_bounds = array<i64: 336, 128>}]} {
    %c0_i32 = arith.constant 0 : i32
    %0 = arith.cmpi eq, %arg2, %c0_i32 : i32
    %1 = arith.extui %0 : i1 to i32
    %c0_i32_0 = arith.constant 0 : i32
    %2 = arith.cmpi ne, %1, %c0_i32_0 : i32
    scf.if %2 {
      %c0_8 = arith.constant 0 : index
      %c0_9 = arith.constant 0 : index
      %9 = vector.load %arg5[%c0_8, %c0_9] : memref<1x128xf32, #tpu.memory_space<vmem>>, vector<1x128xf32>
      %10 = vector.shape_cast %9 : vector<1x128xf32> to vector<1x128xf32>
      %11 = vector.broadcast %10 : vector<1x128xf32> to vector<336x128xf32>
      %c0_10 = arith.constant 0 : index
      %c0_11 = arith.constant 0 : index
      %12 = vector.load %arg6[%c0_10, %c0_11] : memref<336x128xf32, #tpu.memory_space<vmem>>, vector<336x128xf32>
      tpu.vector_store %arg6[%c0_10, %c0_11], %11 {strides = array<i32>} : memref<336x128xf32, #tpu.memory_space<vmem>>, vector<336x128xf32>,
    } else {
    }
    %c0 = arith.constant 0 : index
    %c0_1 = arith.constant 0 : index
    %3 = vector.load %arg6[%c0, %c0_1] : memref<336x128xf32, #tpu.memory_space<vmem>>, vector<336x128xf32>
    %c0_2 = arith.constant 0 : index
    %c0_3 = arith.constant 0 : index
    %4 = vector.load %arg3[%c0_2, %c0_3] : memref<336x32xf32, #tpu.memory_space<vmem>>, vector<336x32xf32>
    %c0_4 = arith.constant 0 : index
    %c0_5 = arith.constant 0 : index
    %5 = vector.load %arg4[%c0_4, %c0_5] : memref<32x128xf32, #tpu.memory_space<vmem>>, vector<32x128xf32>
    %cst = arith.constant dense<0.000000e+00> : vector<336x128xf32>
    %6 = tpu.matmul %4, %5, %cst {dimension_numbers = #tpu.dot_dimension_numbers<[1], [0], [0], [1], [0, 0, 1, 1], [], []>} : vector<336x32xf32>, vector<32x128xf32>, vector<336x128xf32> -> vector<336x128xf32>
    %7 = arith.addf %3, %6 : vector<336x128xf32>
    %c0_6 = arith.constant 0 : index
    %c0_7 = arith.constant 0 : index
    %8 = vector.load %arg6[%c0_6, %c0_7] : memref<336x128xf32, #tpu.memory_space<vmem>>, vector<336x128xf32>
    tpu.vector_store %arg6[%c0_6, %c0_7], %7 {strides = array<i32>} : memref<336x128xf32, #tpu.memory_space<vmem>>, vector<336x128xf32>,
    return
  }
  func.func @transform_0(%arg0: i32, %arg1: i32, %arg2: i32) -> (i32, i32) {
    %c0_i32 = arith.constant 0 : i32
    return %arg0, %arg2 : i32, i32
  }
  func.func @transform_1(%arg0: i32, %arg1: i32, %arg2: i32) -> (i32, i32) {
    %c0_i32 = arith.constant 0 : i32
    return %arg2, %arg1 : i32, i32
  }
  func.func @transform_2(%arg0: i32, %arg1: i32, %arg2: i32) -> (i32, i32) {
    %c0_i32 = arith.constant 0 : i32
    %c0_i32_0 = arith.constant 0 : i32
    return %c0_i32, %arg1 : i32, i32
  }
  func.func @transform_3(%arg0: i32, %arg1: i32, %arg2: i32) -> (i32, i32) {
    %c1_i32 = arith.constant 1 : i32
    %0 = arith.addi %arg0, %c1_i32 : i32
    %c0_i32 = arith.constant 0 : i32
    return %0, %arg1 : i32, i32
  }
}

module attributes {stable_mosaic.version = 11 : i64} {
  func.func @_dwconv_gelu_fc2_kernel(%arg0: i32, %arg1: memref<42xi32, #tpu.memory_space<smem>>, %arg2: memref<16x9xf32, #tpu.memory_space<vmem>>, %arg3: memref<9x128xf32, #tpu.memory_space<vmem>>, %arg4: memref<1x128xf32, #tpu.memory_space<vmem>>, %arg5: memref<128x128xf32, #tpu.memory_space<vmem>>, %arg6: memref<1x128xf32, #tpu.memory_space<vmem>>, %arg7: memref<1344x128xf32, #tpu.memory_space<any>>, %arg8: memref<16x128xf32, #tpu.memory_space<vmem>>, %arg9: memref<2x64x128xf32, #tpu.memory_space<vmem>>, %arg10: memref<2x!tpu.dma_semaphore, #tpu.memory_space<semaphore_mem>>) attributes {dimension_semantics = [#tpu.dimension_semantics<arbitrary>], iteration_bounds = array<i64: 42>, scalar_prefetch = 1 : i64, scratch_operands = 2 : i64, tpu.core_type = #tpu.core_type<tc>, window_params = [{transform_indices = @transform_0, window_bounds = array<i64: 16, 9>}, {pipeline_mode = #tpu.pipeline_mode<synchronous>, transform_indices = @transform_1, window_bounds = array<i64: 9, 128>}, {pipeline_mode = #tpu.pipeline_mode<synchronous>, transform_indices = @transform_2, window_bounds = array<i64: 1, 128>}, {pipeline_mode = #tpu.pipeline_mode<synchronous>, transform_indices = @transform_3, window_bounds = array<i64: 128, 128>}, {pipeline_mode = #tpu.pipeline_mode<synchronous>, transform_indices = @transform_4, window_bounds = array<i64: 1, 128>}, {}, {transform_indices = @transform_6, window_bounds = array<i64: 16, 128>}]} {
    %c0_i32 = arith.constant 0 : i32
    %0 = arith.cmpi eq, %arg0, %c0_i32 : i32
    %1 = arith.extui %0 : i1 to i32
    %c0_i32_0 = arith.constant 0 : i32
    %2 = arith.cmpi ne, %1, %c0_i32_0 : i32
    scf.if %2 {
      %c0_i32_115 = arith.constant 0 : i32
      %c0_i32_116 = arith.constant 0 : i32
      %c312_i32 = arith.constant 312 : i32
      %c0_i32_117 = arith.constant 0 : i32
      %196 = tpu.memref_slice %arg7[%c312_i32, %c0_i32_117] : memref<1344x128xf32, #tpu.memory_space<any>> -> memref<64x128xf32, #tpu.memory_space<any>>
      %c0_i32_118 = arith.constant 0 : i32
      %c0_i32_119 = arith.constant 0 : i32
      %197 = tpu.memref_slice %arg9[%c0_i32_115, %c0_i32_118, %c0_i32_119] : memref<2x64x128xf32, #tpu.memory_space<vmem>> -> memref<1x64x128xf32, #tpu.memory_space<vmem>>
      %198 = tpu.memref_squeeze %197 : memref<1x64x128xf32, #tpu.memory_space<vmem>> -> memref<64x128xf32, #tpu.memory_space<vmem>>
      %199 = tpu.memref_slice %arg10[%c0_i32_116] : memref<2x!tpu.dma_semaphore, #tpu.memory_space<semaphore_mem>> -> memref<1x!tpu.dma_semaphore, #tpu.memory_space<semaphore_mem>>
      %200 = tpu.memref_squeeze %199 : memref<1x!tpu.dma_semaphore, #tpu.memory_space<semaphore_mem>> -> memref<!tpu.dma_semaphore, #tpu.memory_space<semaphore_mem>>
      tpu.enqueue_dma source(%196 : memref<64x128xf32, #tpu.memory_space<any>>) target(%198 : memref<64x128xf32, #tpu.memory_space<vmem>>) target_semaphore(%200 : memref<!tpu.dma_semaphore, #tpu.memory_space<semaphore_mem>>)
    } else {
    }
    %c1_i32 = arith.constant 1 : i32
    %3 = arith.addi %arg0, %c1_i32 : i32
    %c42_i32 = arith.constant 42 : i32
    %4 = arith.cmpi slt, %3, %c42_i32 : i32
    %5 = arith.extui %4 : i1 to i32
    %c0_i32_1 = arith.constant 0 : i32
    %6 = arith.cmpi ne, %5, %c0_i32_1 : i32
    scf.if %6 {
      %c1_i32_115 = arith.constant 1 : i32
      %196 = arith.addi %arg0, %c1_i32_115 : i32
      %c1_i32_116 = arith.constant 1 : i32
      %197 = arith.addi %arg0, %c1_i32_116 : i32
      %c2_i32_117 = arith.constant 2 : i32
      %c0_i32_118 = arith.constant 0 : i32
      %198 = arith.cmpi eq, %c2_i32_117, %c0_i32_118 : i32
      %c1_i32_119 = arith.constant 1 : i32
      %199 = arith.select %198, %c1_i32_119, %c2_i32_117 : i32
      %200 = arith.remsi %197, %199 : i32
      %c0_i32_120 = arith.constant 0 : i32
      %201 = arith.cmpi ne, %200, %c0_i32_120 : i32
      %c0_i32_121 = arith.constant 0 : i32
      %202 = arith.cmpi slt, %200, %c0_i32_121 : i32
      %c0_i32_122 = arith.constant 0 : i32
      %203 = arith.cmpi slt, %199, %c0_i32_122 : i32
      %204 = arith.xori %202, %203 : i1
      %205 = arith.andi %204, %201 : i1
      %206 = arith.addi %200, %199 : i32
      %207 = arith.select %205, %206, %200 : i32
      %c16_i32 = arith.constant 16 : i32
      %208 = arith.muli %196, %c16_i32 : i32
      %c312_i32 = arith.constant 312 : i32
      %209 = arith.addi %c312_i32, %208 : i32
      %c0_i32_123 = arith.constant 0 : i32
      %210 = tpu.memref_slice %arg7[%209, %c0_i32_123] : memref<1344x128xf32, #tpu.memory_space<any>> -> memref<64x128xf32, #tpu.memory_space<any>>
      %c0_i32_124 = arith.constant 0 : i32
      %c0_i32_125 = arith.constant 0 : i32
      %211 = tpu.memref_slice %arg9[%207, %c0_i32_124, %c0_i32_125] : memref<2x64x128xf32, #tpu.memory_space<vmem>> -> memref<1x64x128xf32, #tpu.memory_space<vmem>>
      %212 = tpu.memref_squeeze %211 : memref<1x64x128xf32, #tpu.memory_space<vmem>> -> memref<64x128xf32, #tpu.memory_space<vmem>>
      %213 = tpu.memref_slice %arg10[%207] : memref<2x!tpu.dma_semaphore, #tpu.memory_space<semaphore_mem>> -> memref<1x!tpu.dma_semaphore, #tpu.memory_space<semaphore_mem>>
      %214 = tpu.memref_squeeze %213 : memref<1x!tpu.dma_semaphore, #tpu.memory_space<semaphore_mem>> -> memref<!tpu.dma_semaphore, #tpu.memory_space<semaphore_mem>>
      tpu.enqueue_dma source(%210 : memref<64x128xf32, #tpu.memory_space<any>>) target(%212 : memref<64x128xf32, #tpu.memory_space<vmem>>) target_semaphore(%214 : memref<!tpu.dma_semaphore, #tpu.memory_space<semaphore_mem>>)
    } else {
    }
    %c2_i32 = arith.constant 2 : i32
    %c0_i32_2 = arith.constant 0 : i32
    %7 = arith.cmpi eq, %c2_i32, %c0_i32_2 : i32
    %c1_i32_3 = arith.constant 1 : i32
    %8 = arith.select %7, %c1_i32_3, %c2_i32 : i32
    %9 = arith.remsi %arg0, %8 : i32
    %c0_i32_4 = arith.constant 0 : i32
    %10 = arith.cmpi ne, %9, %c0_i32_4 : i32
    %c0_i32_5 = arith.constant 0 : i32
    %11 = arith.cmpi slt, %9, %c0_i32_5 : i32
    %c0_i32_6 = arith.constant 0 : i32
    %12 = arith.cmpi slt, %8, %c0_i32_6 : i32
    %13 = arith.xori %11, %12 : i1
    %14 = arith.andi %13, %10 : i1
    %15 = arith.addi %9, %8 : i32
    %16 = arith.select %14, %15, %9 : i32
    %c0_i32_7 = arith.constant 0 : i32
    %c0_i32_8 = arith.constant 0 : i32
    %17 = tpu.memref_slice %arg7[%c0_i32_7, %c0_i32_8] : memref<1344x128xf32, #tpu.memory_space<any>> -> memref<64x128xf32, #tpu.memory_space<any>>
    %c0_i32_9 = arith.constant 0 : i32
    %c0_i32_10 = arith.constant 0 : i32
    %18 = tpu.memref_slice %arg9[%16, %c0_i32_9, %c0_i32_10] : memref<2x64x128xf32, #tpu.memory_space<vmem>> -> memref<1x64x128xf32, #tpu.memory_space<vmem>>
    %19 = tpu.memref_squeeze %18 : memref<1x64x128xf32, #tpu.memory_space<vmem>> -> memref<64x128xf32, #tpu.memory_space<vmem>>
    %20 = tpu.memref_slice %arg10[%16] : memref<2x!tpu.dma_semaphore, #tpu.memory_space<semaphore_mem>> -> memref<1x!tpu.dma_semaphore, #tpu.memory_space<semaphore_mem>>
    %21 = tpu.memref_squeeze %20 : memref<1x!tpu.dma_semaphore, #tpu.memory_space<semaphore_mem>> -> memref<!tpu.dma_semaphore, #tpu.memory_space<semaphore_mem>>
    tpu.wait_dma2 semaphore(%21 : memref<!tpu.dma_semaphore, #tpu.memory_space<semaphore_mem>>) src(%17 : memref<64x128xf32, #tpu.memory_space<any>>) dst(%19 : memref<64x128xf32, #tpu.memory_space<vmem>>)
    %22 = arith.index_cast %arg0 : i32 to index
    %23 = memref.load %arg1[%22] : memref<42xi32, #tpu.memory_space<smem>>
    %c0 = arith.constant 0 : index
    %c0_11 = arith.constant 0 : index
    %24 = vector.load %arg4[%c0, %c0_11] : memref<1x128xf32, #tpu.memory_space<vmem>>, vector<1x128xf32>
    %25 = vector.shape_cast %24 : vector<1x128xf32> to vector<1x128xf32>
    %26 = vector.broadcast %25 : vector<1x128xf32> to vector<16x128xf32>
    %c-1_i32 = arith.constant -1 : i32
    %27 = arith.muli %c-1_i32, %23 : i32
    %c24_i32 = arith.constant 24 : i32
    %28 = arith.addi %c24_i32, %27 : i32
    %c-1_i32_12 = arith.constant -1 : i32
    %29 = arith.addi %28, %c-1_i32_12 : i32
    %c0_i32_13 = arith.constant 0 : i32
    %c0_i32_14 = arith.constant 0 : i32
    %30 = tpu.memref_slice %arg9[%16, %c0_i32_13, %c0_i32_14] : memref<2x64x128xf32, #tpu.memory_space<vmem>> -> memref<1x64x128xf32, #tpu.memory_space<vmem>>
    %31 = tpu.memref_squeeze %30 : memref<1x64x128xf32, #tpu.memory_space<vmem>> -> memref<64x128xf32, #tpu.memory_space<vmem>>
    %32 = arith.index_cast %29 : i32 to index
    %c0_15 = arith.constant 0 : index
    %33 = vector.load %31[%32, %c0_15] : memref<64x128xf32, #tpu.memory_space<vmem>>, vector<16x128xf32>
    %c0_16 = arith.constant 0 : index
    %c0_17 = arith.constant 0 : index
    %34 = vector.load %arg3[%c0_16, %c0_17] : memref<9x128xf32, #tpu.memory_space<vmem>>, vector<1x128xf32>
    %c0_18 = arith.constant 0 : index
    %c0_19 = arith.constant 0 : index
    %35 = vector.load %arg2[%c0_18, %c0_19] : memref<16x9xf32, #tpu.memory_space<vmem>>, vector<16x1xf32>
    %cst = arith.constant 5.000000e-01 : f32
    %36 = vector.broadcast %cst : f32 to vector<16x1xf32>
    %37 = arith.cmpf ogt, %35, %36 : vector<16x1xf32>
    %cst_20 = arith.constant 0.000000e+00 : f32
    %38 = vector.shape_cast %37 : vector<16x1xi1> to vector<16x1xi1>
    %39 = vector.broadcast %38 : vector<16x1xi1> to vector<16x128xi1>
    %40 = vector.broadcast %cst_20 : f32 to vector<16x128xf32>
    %41 = arith.select %39, %33, %40 : vector<16x128xi1>, vector<16x128xf32>
    %42 = vector.broadcast %34 : vector<1x128xf32> to vector<16x128xf32>
    %43 = arith.mulf %41, %42 : vector<16x128xf32>
    %44 = arith.addf %26, %43 : vector<16x128xf32>
    %c-1_i32_21 = arith.constant -1 : i32
    %45 = arith.muli %c-1_i32_21, %23 : i32
    %c24_i32_22 = arith.constant 24 : i32
    %46 = arith.addi %c24_i32_22, %45 : i32
    %c0_i32_23 = arith.constant 0 : i32
    %47 = arith.addi %46, %c0_i32_23 : i32
    %c0_i32_24 = arith.constant 0 : i32
    %c0_i32_25 = arith.constant 0 : i32
    %48 = tpu.memref_slice %arg9[%16, %c0_i32_24, %c0_i32_25] : memref<2x64x128xf32, #tpu.memory_space<vmem>> -> memref<1x64x128xf32, #tpu.memory_space<vmem>>
    %49 = tpu.memref_squeeze %48 : memref<1x64x128xf32, #tpu.memory_space<vmem>> -> memref<64x128xf32, #tpu.memory_space<vmem>>
    %50 = arith.index_cast %47 : i32 to index
    %c0_26 = arith.constant 0 : index
    %51 = vector.load %49[%50, %c0_26] : memref<64x128xf32, #tpu.memory_space<vmem>>, vector<16x128xf32>
    %c1 = arith.constant 1 : index
    %c0_27 = arith.constant 0 : index
    %52 = vector.load %arg3[%c1, %c0_27] : memref<9x128xf32, #tpu.memory_space<vmem>>, vector<1x128xf32>
    %c0_28 = arith.constant 0 : index
    %c1_29 = arith.constant 1 : index
    %53 = vector.load %arg2[%c0_28, %c1_29] : memref<16x9xf32, #tpu.memory_space<vmem>>, vector<16x1xf32>
    %cst_30 = arith.constant 5.000000e-01 : f32
    %54 = vector.broadcast %cst_30 : f32 to vector<16x1xf32>
    %55 = arith.cmpf ogt, %53, %54 : vector<16x1xf32>
    %cst_31 = arith.constant 0.000000e+00 : f32
    %56 = vector.shape_cast %55 : vector<16x1xi1> to vector<16x1xi1>
    %57 = vector.broadcast %56 : vector<16x1xi1> to vector<16x128xi1>
    %58 = vector.broadcast %cst_31 : f32 to vector<16x128xf32>
    %59 = arith.select %57, %51, %58 : vector<16x128xi1>, vector<16x128xf32>
    %60 = vector.broadcast %52 : vector<1x128xf32> to vector<16x128xf32>
    %61 = arith.mulf %59, %60 : vector<16x128xf32>
    %62 = arith.addf %44, %61 : vector<16x128xf32>
    %c-1_i32_32 = arith.constant -1 : i32
    %63 = arith.muli %c-1_i32_32, %23 : i32
    %c24_i32_33 = arith.constant 24 : i32
    %64 = arith.addi %c24_i32_33, %63 : i32
    %c1_i32_34 = arith.constant 1 : i32
    %65 = arith.addi %64, %c1_i32_34 : i32
    %c0_i32_35 = arith.constant 0 : i32
    %c0_i32_36 = arith.constant 0 : i32
    %66 = tpu.memref_slice %arg9[%16, %c0_i32_35, %c0_i32_36] : memref<2x64x128xf32, #tpu.memory_space<vmem>> -> memref<1x64x128xf32, #tpu.memory_space<vmem>>
    %67 = tpu.memref_squeeze %66 : memref<1x64x128xf32, #tpu.memory_space<vmem>> -> memref<64x128xf32, #tpu.memory_space<vmem>>
    %68 = arith.index_cast %65 : i32 to index
    %c0_37 = arith.constant 0 : index
    %69 = vector.load %67[%68, %c0_37] : memref<64x128xf32, #tpu.memory_space<vmem>>, vector<16x128xf32>
    %c2 = arith.constant 2 : index
    %c0_38 = arith.constant 0 : index
    %70 = vector.load %arg3[%c2, %c0_38] : memref<9x128xf32, #tpu.memory_space<vmem>>, vector<1x128xf32>
    %c0_39 = arith.constant 0 : index
    %c2_40 = arith.constant 2 : index
    %71 = vector.load %arg2[%c0_39, %c2_40] : memref<16x9xf32, #tpu.memory_space<vmem>>, vector<16x1xf32>
    %cst_41 = arith.constant 5.000000e-01 : f32
    %72 = vector.broadcast %cst_41 : f32 to vector<16x1xf32>
    %73 = arith.cmpf ogt, %71, %72 : vector<16x1xf32>
    %cst_42 = arith.constant 0.000000e+00 : f32
    %74 = vector.shape_cast %73 : vector<16x1xi1> to vector<16x1xi1>
    %75 = vector.broadcast %74 : vector<16x1xi1> to vector<16x128xi1>
    %76 = vector.broadcast %cst_42 : f32 to vector<16x128xf32>
    %77 = arith.select %75, %69, %76 : vector<16x128xi1>, vector<16x128xf32>
    %78 = vector.broadcast %70 : vector<1x128xf32> to vector<16x128xf32>
    %79 = arith.mulf %77, %78 : vector<16x128xf32>
    %80 = arith.addf %62, %79 : vector<16x128xf32>
    %c0_i32_43 = arith.constant 0 : i32
    %81 = arith.muli %c0_i32_43, %23 : i32
    %c24_i32_44 = arith.constant 24 : i32
    %82 = arith.addi %c24_i32_44, %81 : i32
    %c-1_i32_45 = arith.constant -1 : i32
    %83 = arith.addi %82, %c-1_i32_45 : i32
    %c0_i32_46 = arith.constant 0 : i32
    %c0_i32_47 = arith.constant 0 : i32
    %84 = tpu.memref_slice %arg9[%16, %c0_i32_46, %c0_i32_47] : memref<2x64x128xf32, #tpu.memory_space<vmem>> -> memref<1x64x128xf32, #tpu.memory_space<vmem>>
    %85 = tpu.memref_squeeze %84 : memref<1x64x128xf32, #tpu.memory_space<vmem>> -> memref<64x128xf32, #tpu.memory_space<vmem>>
    %86 = arith.index_cast %83 : i32 to index
    %c0_48 = arith.constant 0 : index
    %87 = vector.load %85[%86, %c0_48] : memref<64x128xf32, #tpu.memory_space<vmem>>, vector<16x128xf32>
    %c3 = arith.constant 3 : index
    %c0_49 = arith.constant 0 : index
    %88 = vector.load %arg3[%c3, %c0_49] : memref<9x128xf32, #tpu.memory_space<vmem>>, vector<1x128xf32>
    %c0_50 = arith.constant 0 : index
    %c3_51 = arith.constant 3 : index
    %89 = vector.load %arg2[%c0_50, %c3_51] : memref<16x9xf32, #tpu.memory_space<vmem>>, vector<16x1xf32>
    %cst_52 = arith.constant 5.000000e-01 : f32
    %90 = vector.broadcast %cst_52 : f32 to vector<16x1xf32>
    %91 = arith.cmpf ogt, %89, %90 : vector<16x1xf32>
    %cst_53 = arith.constant 0.000000e+00 : f32
    %92 = vector.shape_cast %91 : vector<16x1xi1> to vector<16x1xi1>
    %93 = vector.broadcast %92 : vector<16x1xi1> to vector<16x128xi1>
    %94 = vector.broadcast %cst_53 : f32 to vector<16x128xf32>
    %95 = arith.select %93, %87, %94 : vector<16x128xi1>, vector<16x128xf32>
    %96 = vector.broadcast %88 : vector<1x128xf32> to vector<16x128xf32>
    %97 = arith.mulf %95, %96 : vector<16x128xf32>
    %98 = arith.addf %80, %97 : vector<16x128xf32>
    %c0_i32_54 = arith.constant 0 : i32
    %99 = arith.muli %c0_i32_54, %23 : i32
    %c24_i32_55 = arith.constant 24 : i32
    %100 = arith.addi %c24_i32_55, %99 : i32
    %c0_i32_56 = arith.constant 0 : i32
    %101 = arith.addi %100, %c0_i32_56 : i32
    %c0_i32_57 = arith.constant 0 : i32
    %c0_i32_58 = arith.constant 0 : i32
    %102 = tpu.memref_slice %arg9[%16, %c0_i32_57, %c0_i32_58] : memref<2x64x128xf32, #tpu.memory_space<vmem>> -> memref<1x64x128xf32, #tpu.memory_space<vmem>>
    %103 = tpu.memref_squeeze %102 : memref<1x64x128xf32, #tpu.memory_space<vmem>> -> memref<64x128xf32, #tpu.memory_space<vmem>>
    %104 = arith.index_cast %101 : i32 to index
    %c0_59 = arith.constant 0 : index
    %105 = vector.load %103[%104, %c0_59] : memref<64x128xf32, #tpu.memory_space<vmem>>, vector<16x128xf32>
    %c4 = arith.constant 4 : index
    %c0_60 = arith.constant 0 : index
    %106 = vector.load %arg3[%c4, %c0_60] : memref<9x128xf32, #tpu.memory_space<vmem>>, vector<1x128xf32>
    %107 = vector.broadcast %106 : vector<1x128xf32> to vector<16x128xf32>
    %108 = arith.mulf %105, %107 : vector<16x128xf32>
    %109 = arith.addf %98, %108 : vector<16x128xf32>
    %c0_i32_61 = arith.constant 0 : i32
    %110 = arith.muli %c0_i32_61, %23 : i32
    %c24_i32_62 = arith.constant 24 : i32
    %111 = arith.addi %c24_i32_62, %110 : i32
    %c1_i32_63 = arith.constant 1 : i32
    %112 = arith.addi %111, %c1_i32_63 : i32
    %c0_i32_64 = arith.constant 0 : i32
    %c0_i32_65 = arith.constant 0 : i32
    %113 = tpu.memref_slice %arg9[%16, %c0_i32_64, %c0_i32_65] : memref<2x64x128xf32, #tpu.memory_space<vmem>> -> memref<1x64x128xf32, #tpu.memory_space<vmem>>
    %114 = tpu.memref_squeeze %113 : memref<1x64x128xf32, #tpu.memory_space<vmem>> -> memref<64x128xf32, #tpu.memory_space<vmem>>
    %115 = arith.index_cast %112 : i32 to index
    %c0_66 = arith.constant 0 : index
    %116 = vector.load %114[%115, %c0_66] : memref<64x128xf32, #tpu.memory_space<vmem>>, vector<16x128xf32>
    %c5 = arith.constant 5 : index
    %c0_67 = arith.constant 0 : index
    %117 = vector.load %arg3[%c5, %c0_67] : memref<9x128xf32, #tpu.memory_space<vmem>>, vector<1x128xf32>
    %c0_68 = arith.constant 0 : index
    %c5_69 = arith.constant 5 : index
    %118 = vector.load %arg2[%c0_68, %c5_69] : memref<16x9xf32, #tpu.memory_space<vmem>>, vector<16x1xf32>
    %cst_70 = arith.constant 5.000000e-01 : f32
    %119 = vector.broadcast %cst_70 : f32 to vector<16x1xf32>
    %120 = arith.cmpf ogt, %118, %119 : vector<16x1xf32>
    %cst_71 = arith.constant 0.000000e+00 : f32
    %121 = vector.shape_cast %120 : vector<16x1xi1> to vector<16x1xi1>
    %122 = vector.broadcast %121 : vector<16x1xi1> to vector<16x128xi1>
    %123 = vector.broadcast %cst_71 : f32 to vector<16x128xf32>
    %124 = arith.select %122, %116, %123 : vector<16x128xi1>, vector<16x128xf32>
    %125 = vector.broadcast %117 : vector<1x128xf32> to vector<16x128xf32>
    %126 = arith.mulf %124, %125 : vector<16x128xf32>
    %127 = arith.addf %109, %126 : vector<16x128xf32>
    %c1_i32_72 = arith.constant 1 : i32
    %128 = arith.muli %c1_i32_72, %23 : i32
    %c24_i32_73 = arith.constant 24 : i32
    %129 = arith.addi %c24_i32_73, %128 : i32
    %c-1_i32_74 = arith.constant -1 : i32
    %130 = arith.addi %129, %c-1_i32_74 : i32
    %c0_i32_75 = arith.constant 0 : i32
    %c0_i32_76 = arith.constant 0 : i32
    %131 = tpu.memref_slice %arg9[%16, %c0_i32_75, %c0_i32_76] : memref<2x64x128xf32, #tpu.memory_space<vmem>> -> memref<1x64x128xf32, #tpu.memory_space<vmem>>
    %132 = tpu.memref_squeeze %131 : memref<1x64x128xf32, #tpu.memory_space<vmem>> -> memref<64x128xf32, #tpu.memory_space<vmem>>
    %133 = arith.index_cast %130 : i32 to index
    %c0_77 = arith.constant 0 : index
    %134 = vector.load %132[%133, %c0_77] : memref<64x128xf32, #tpu.memory_space<vmem>>, vector<16x128xf32>
    %c6 = arith.constant 6 : index
    %c0_78 = arith.constant 0 : index
    %135 = vector.load %arg3[%c6, %c0_78] : memref<9x128xf32, #tpu.memory_space<vmem>>, vector<1x128xf32>
    %c0_79 = arith.constant 0 : index
    %c6_80 = arith.constant 6 : index
    %136 = vector.load %arg2[%c0_79, %c6_80] : memref<16x9xf32, #tpu.memory_space<vmem>>, vector<16x1xf32>
    %cst_81 = arith.constant 5.000000e-01 : f32
    %137 = vector.broadcast %cst_81 : f32 to vector<16x1xf32>
    %138 = arith.cmpf ogt, %136, %137 : vector<16x1xf32>
    %cst_82 = arith.constant 0.000000e+00 : f32
    %139 = vector.shape_cast %138 : vector<16x1xi1> to vector<16x1xi1>
    %140 = vector.broadcast %139 : vector<16x1xi1> to vector<16x128xi1>
    %141 = vector.broadcast %cst_82 : f32 to vector<16x128xf32>
    %142 = arith.select %140, %134, %141 : vector<16x128xi1>, vector<16x128xf32>
    %143 = vector.broadcast %135 : vector<1x128xf32> to vector<16x128xf32>
    %144 = arith.mulf %142, %143 : vector<16x128xf32>
    %145 = arith.addf %127, %144 : vector<16x128xf32>
    %c1_i32_83 = arith.constant 1 : i32
    %146 = arith.muli %c1_i32_83, %23 : i32
    %c24_i32_84 = arith.constant 24 : i32
    %147 = arith.addi %c24_i32_84, %146 : i32
    %c0_i32_85 = arith.constant 0 : i32
    %148 = arith.addi %147, %c0_i32_85 : i32
    %c0_i32_86 = arith.constant 0 : i32
    %c0_i32_87 = arith.constant 0 : i32
    %149 = tpu.memref_slice %arg9[%16, %c0_i32_86, %c0_i32_87] : memref<2x64x128xf32, #tpu.memory_space<vmem>> -> memref<1x64x128xf32, #tpu.memory_space<vmem>>
    %150 = tpu.memref_squeeze %149 : memref<1x64x128xf32, #tpu.memory_space<vmem>> -> memref<64x128xf32, #tpu.memory_space<vmem>>
    %151 = arith.index_cast %148 : i32 to index
    %c0_88 = arith.constant 0 : index
    %152 = vector.load %150[%151, %c0_88] : memref<64x128xf32, #tpu.memory_space<vmem>>, vector<16x128xf32>
    %c7 = arith.constant 7 : index
    %c0_89 = arith.constant 0 : index
    %153 = vector.load %arg3[%c7, %c0_89] : memref<9x128xf32, #tpu.memory_space<vmem>>, vector<1x128xf32>
    %c0_90 = arith.constant 0 : index
    %c7_91 = arith.constant 7 : index
    %154 = vector.load %arg2[%c0_90, %c7_91] : memref<16x9xf32, #tpu.memory_space<vmem>>, vector<16x1xf32>
    %cst_92 = arith.constant 5.000000e-01 : f32
    %155 = vector.broadcast %cst_92 : f32 to vector<16x1xf32>
    %156 = arith.cmpf ogt, %154, %155 : vector<16x1xf32>
    %cst_93 = arith.constant 0.000000e+00 : f32
    %157 = vector.shape_cast %156 : vector<16x1xi1> to vector<16x1xi1>
    %158 = vector.broadcast %157 : vector<16x1xi1> to vector<16x128xi1>
    %159 = vector.broadcast %cst_93 : f32 to vector<16x128xf32>
    %160 = arith.select %158, %152, %159 : vector<16x128xi1>, vector<16x128xf32>
    %161 = vector.broadcast %153 : vector<1x128xf32> to vector<16x128xf32>
    %162 = arith.mulf %160, %161 : vector<16x128xf32>
    %163 = arith.addf %145, %162 : vector<16x128xf32>
    %c1_i32_94 = arith.constant 1 : i32
    %164 = arith.muli %c1_i32_94, %23 : i32
    %c24_i32_95 = arith.constant 24 : i32
    %165 = arith.addi %c24_i32_95, %164 : i32
    %c1_i32_96 = arith.constant 1 : i32
    %166 = arith.addi %165, %c1_i32_96 : i32
    %c0_i32_97 = arith.constant 0 : i32
    %c0_i32_98 = arith.constant 0 : i32
    %167 = tpu.memref_slice %arg9[%16, %c0_i32_97, %c0_i32_98] : memref<2x64x128xf32, #tpu.memory_space<vmem>> -> memref<1x64x128xf32, #tpu.memory_space<vmem>>
    %168 = tpu.memref_squeeze %167 : memref<1x64x128xf32, #tpu.memory_space<vmem>> -> memref<64x128xf32, #tpu.memory_space<vmem>>
    %169 = arith.index_cast %166 : i32 to index
    %c0_99 = arith.constant 0 : index
    %170 = vector.load %168[%169, %c0_99] : memref<64x128xf32, #tpu.memory_space<vmem>>, vector<16x128xf32>
    %c8 = arith.constant 8 : index
    %c0_100 = arith.constant 0 : index
    %171 = vector.load %arg3[%c8, %c0_100] : memref<9x128xf32, #tpu.memory_space<vmem>>, vector<1x128xf32>
    %c0_101 = arith.constant 0 : index
    %c8_102 = arith.constant 8 : index
    %172 = vector.load %arg2[%c0_101, %c8_102] : memref<16x9xf32, #tpu.memory_space<vmem>>, vector<16x1xf32>
    %cst_103 = arith.constant 5.000000e-01 : f32
    %173 = vector.broadcast %cst_103 : f32 to vector<16x1xf32>
    %174 = arith.cmpf ogt, %172, %173 : vector<16x1xf32>
    %cst_104 = arith.constant 0.000000e+00 : f32
    %175 = vector.shape_cast %174 : vector<16x1xi1> to vector<16x1xi1>
    %176 = vector.broadcast %175 : vector<16x1xi1> to vector<16x128xi1>
    %177 = vector.broadcast %cst_104 : f32 to vector<16x128xf32>
    %178 = arith.select %176, %170, %177 : vector<16x128xi1>, vector<16x128xf32>
    %179 = vector.broadcast %171 : vector<1x128xf32> to vector<16x128xf32>
    %180 = arith.mulf %178, %179 : vector<16x128xf32>
    %181 = arith.addf %163, %180 : vector<16x128xf32>
    %cst_105 = arith.constant 5.000000e-01 : f32
    %182 = vector.broadcast %cst_105 : f32 to vector<16x128xf32>
    %183 = arith.mulf %182, %181 : vector<16x128xf32>
    %cst_106 = arith.constant 0.707106769 : f32
    %184 = vector.broadcast %cst_106 : f32 to vector<16x128xf32>
    %185 = arith.mulf %181, %184 : vector<16x128xf32>
    %186 = math.erf %185 : vector<16x128xf32>
    %cst_107 = arith.constant 1.000000e+00 : f32
    %187 = vector.broadcast %cst_107 : f32 to vector<16x128xf32>
    %188 = arith.addf %187, %186 : vector<16x128xf32>
    %189 = arith.mulf %183, %188 : vector<16x128xf32>
    %c0_108 = arith.constant 0 : index
    %c0_109 = arith.constant 0 : index
    %190 = vector.load %arg5[%c0_108, %c0_109] : memref<128x128xf32, #tpu.memory_space<vmem>>, vector<128x128xf32>
    %cst_110 = arith.constant dense<0.000000e+00> : vector<16x128xf32>
    %191 = tpu.matmul %189, %190, %cst_110 {dimension_numbers = #tpu.dot_dimension_numbers<[1], [0], [0], [1], [0, 0, 1, 1], [], []>} : vector<16x128xf32>, vector<128x128xf32>, vector<16x128xf32> -> vector<16x128xf32>
    %c0_111 = arith.constant 0 : index
    %c0_112 = arith.constant 0 : index
    %192 = vector.load %arg6[%c0_111, %c0_112] : memref<1x128xf32, #tpu.memory_space<vmem>>, vector<1x128xf32>
    %193 = vector.broadcast %192 : vector<1x128xf32> to vector<16x128xf32>
    %194 = arith.addf %191, %193 : vector<16x128xf32>
    %c0_113 = arith.constant 0 : index
    %c0_114 = arith.constant 0 : index
    %195 = vector.load %arg8[%c0_113, %c0_114] : memref<16x128xf32, #tpu.memory_space<vmem>>, vector<16x128xf32>
    tpu.vector_store %arg8[%c0_113, %c0_114], %194 {strides = array<i32>} : memref<16x128xf32, #tpu.memory_space<vmem>>, vector<16x128xf32>,
    return
  }
  func.func @transform_0(%arg0: i32, %arg1: memref<42xi32, #tpu.memory_space<smem>>) -> (i32, i32) {
    %c0_i32 = arith.constant 0 : i32
    %c0_i32_0 = arith.constant 0 : i32
    return %arg0, %c0_i32 : i32, i32
  }
  func.func @transform_1(%arg0: i32, %arg1: memref<42xi32, #tpu.memory_space<smem>>) -> (i32, i32) {
    %c0_i32 = arith.constant 0 : i32
    %c0_i32_0 = arith.constant 0 : i32
    %c0_i32_1 = arith.constant 0 : i32
    return %c0_i32, %c0_i32_0 : i32, i32
  }
  func.func @transform_2(%arg0: i32, %arg1: memref<42xi32, #tpu.memory_space<smem>>) -> (i32, i32) {
    %c0_i32 = arith.constant 0 : i32
    %c0_i32_0 = arith.constant 0 : i32
    %c0_i32_1 = arith.constant 0 : i32
    return %c0_i32, %c0_i32_0 : i32, i32
  }
  func.func @transform_3(%arg0: i32, %arg1: memref<42xi32, #tpu.memory_space<smem>>) -> (i32, i32) {
    %c0_i32 = arith.constant 0 : i32
    %c0_i32_0 = arith.constant 0 : i32
    %c0_i32_1 = arith.constant 0 : i32
    return %c0_i32, %c0_i32_0 : i32, i32
  }
  func.func @transform_4(%arg0: i32, %arg1: memref<42xi32, #tpu.memory_space<smem>>) -> (i32, i32) {
    %c0_i32 = arith.constant 0 : i32
    %c0_i32_0 = arith.constant 0 : i32
    %c0_i32_1 = arith.constant 0 : i32
    return %c0_i32, %c0_i32_0 : i32, i32
  }
  func.func @transform_6(%arg0: i32, %arg1: memref<42xi32, #tpu.memory_space<smem>>) -> (i32, i32) {
    %c0_i32 = arith.constant 0 : i32
    %c0_i32_0 = arith.constant 0 : i32
    return %arg0, %c0_i32 : i32, i32
  }
}

</mosaic_0001>

<bundles_post_ra>
// kernel: conv_ffn_forward.3
= control target key start
LH: loop header
LB: loop body
LE: loop exit
PB: predicated region body
PF: predicated region fallthrough
CT: control target
= control target key end

     0   :  { %s885_s27 = smov [#allocation5]   ;;  %s1148_s0 = inlined_call_operand.vmem [shape: s32[42], index: 0, kind: input, shape index: {}]   ;;  %s1149_s1 = inlined_call_operand.vmem [shape: f32[672,9], index: 1, kind: input, shape index: {}]   ;;  %s1150_s2 = inlined_call_operand.vmem [shape: f32[9,128], index: 2, kind: input, shape index: {}]   ;;  %s1151_s3 = inlined_call_operand.vmem [shape: f32[1,128], index: 3, kind: input, shape index: {}]   ;;  %s1152_s4 = inlined_call_operand.vmem [shape: f32[128,128], index: 4, kind: input, shape index: {}]   ;;  %s1153_s5 = inlined_call_operand.vmem [shape: f32[1,128], index: 5, kind: input, shape index: {}]   ;;  %s1154_s6 = inlined_call_operand.vmem [shape: f32[1344,128], index: 6, kind: input, shape index: {}]   ;;  %s1155_s7 = inlined_call_operand.vmem [shape: f32[672,128], index: 7, kind: output, shape index: {}]  }
   0x1   :  { %s13_s26 = sshll.u32 %s1148_s0, 4  ;;  %s14_s26 = int_to_ptr.vmem [resolvable:$true] %s13_s26 }
   0x2   :  { %16 = dma.vmem_to_smem %s14_s26, 16, %s885_s27, [#allocation4] }
   0x3   :  { %877 = dma.done.wait [#allocation4], 16 }
   0x4   :  { %878 = vsyncadd [#allocation4], 4294967280 }
   0x5   :  { %19 = sfence }
   0x6   :  { %s937_s28 = smov 0  }
   0x7 LB: > { %s943_s29 = sadd.s32 4294967295, %s883_s28   ;;  %p755_p0 = scmp.ge.s32.totalorder %s883_s28, 1  ;;  %s883_s28 = sphi %s937_s28, %s25_s28  }
   0x8   : > { %p198_p1 = scmp.lt.s32.totalorder %s883_s28, 43 }
   0xa   : > { %p199_p2 = pnand %p755_p0, %p198_p1 }
   0xb   : > { %s756_s0 = sshll.u32 (!%p199_p2), %s943_s29, 1  ;;  %p760_p4 = scmp.ne.s32.totalorder (!%p199_p2), %s943_s29, 0 }
   0xc   : > { %202 = sbr.rel (%p199_p2) target bundleno = 414 (0x19e), region = 40  ;;  %p227_p3 = scmp.lt.s32.totalorder (!%p199_p2), %s756_s0, 83 }
  0x11   : > { %s1157_s0 = smov (!%p227_p3, %s756_s0), 83  ;;  %241 = sbr.rel (%p760_p4) target bundleno = 32 (0x20), region = 44 }
  0x12   : > { %s757_s30 = sshll.u32 %s1157_s0, 3 }
  0x13   : > { %s951_s10 = scalar_lea.vmem %s1149_s1, %s757_s30  ;;  %s956_s13 = scalar_lea.vmem %s1155_s7, %s757_s30 }
  0x16   : > { %v761_v0 = vld [vmem:[%s1154_s6 + $0x138] sm:$0xff]  ;;  %v762_v1 = vld [vmem:[%s1154_s6 + $0x140] sm:$0xff]  ;;  %v763_v2 = vld [vmem:[%s1154_s6 + $0x148] sm:$0xff] }
  0x17   : > { %254 = vst [vmem:[#allocation2] sm:$0xff] %v761_v0  ;;  %v764_v3 = vld [vmem:[%s1154_s6 + $0x150] sm:$0xff]  ;;  %v765_v4 = vld [vmem:[%s1154_s6 + $0x158] sm:$0xff]  ;;  %v766_v5 = vld [vmem:[%s1154_s6 + $0x160] sm:$0xff] }
  0x18   : > { %256 = vst [vmem:[#allocation2 + $0x8] sm:$0xff] %v762_v1  ;;  %v767_v6 = vld [vmem:[%s1154_s6 + $0x168] sm:$0xff]  ;;  %v768_v7 = vld [vmem:[%s1154_s6 + $0x170] sm:$0xff] }
  0x19   : > { %258 = vst [vmem:[#allocation2 + $0x10] sm:$0xff] %v763_v2 }
  0x1a   : > { %260 = vst [vmem:[#allocation2 + $0x18] sm:$0xff] %v764_v3 }
  0x1b   : > { %262 = vst [vmem:[#allocation2 + $0x20] sm:$0xff] %v765_v4 }
  0x1c   : > { %264 = vst [vmem:[#allocation2 + $0x28] sm:$0xff] %v766_v5 }
  0x1d   : > { %266 = vst [vmem:[#allocation2 + $0x30] sm:$0xff] %v767_v6 }
  0x1e   : > { %268 = vst [vmem:[#allocation2 + $0x38] sm:$0xff] %v768_v7 }
  0x1f   : > { %274 = vsyncadd [#allocation3], 1024 }
  0x20 PF: > { %s275_s8 = sadd.s32 1, %s943_s29 }
  0x21   : > { %p769_p5 = scmp.ge.s32.totalorder %s275_s8, 42 }
  0x22   : > { %p280_p6 = scmp.lt.s32.totalorder (!%p769_p5), %s275_s8, 0  ;;  %s281_s9 = ssub.s32 (!%p769_p5), 0, %s275_s8 }
  0x23   : > { %279 = sbr.rel (%p769_p5) target bundleno = 55 (0x37), region = 67  ;;  %s770_s11 = smin.u32 (!%p769_p5), %s281_s9, %s275_s8 }
  0x24   : > { %s283_s12 = sand.u32 (!%p769_p5), 1, %s770_s11   ;;  %s773_s14 = sshll.u32 (!%p769_p5), %s943_s29, 4 }
  0x25   : > { %s284_s15 = ssub.s32 (!%p769_p5), 0, %s283_s12  ;;  %s702_s18 = scalar_lea.vmem (!%p769_p5), %s1154_s6, %s773_s14 }
  0x28   : > { %s1159_s15 = smov (!%p280_p6, %s284_s15), %s283_s12  ;;  %v775_v8 = vld [vmem:[%s702_s18 + $0x148] sm:$0xff]  ;;  %v776_v9 = vld [vmem:[%s702_s18 + $0x150] sm:$0xff]  ;;  %v777_v10 = vld [vmem:[%s702_s18 + $0x158] sm:$0xff] }
  0x29   : > { %p772_p7 = scmp.lt.s32.totalorder %s1159_s15, 0  ;;  %s290_s19 = sadd.s32 2, %s1159_s15  ;;  %v778_v11 = vld [vmem:[%s702_s18 + $0x160] sm:$0xff]  ;;  %v779_v12 = vld [vmem:[%s702_s18 + $0x168] sm:$0xff]  ;;  %v780_v13 = vld [vmem:[%s702_s18 + $0x170] sm:$0xff] }
  0x2a   : > { %v781_v14 = vld [vmem:[%s702_s18 + $0x178] sm:$0xff]  ;;  %v782_v15 = vld [vmem:[%s702_s18 + $0x180] sm:$0xff] }
  0x2b   : > { %s1161_s19 = smov (!%p772_p7, %s290_s19), %s1159_s15 }
  0x2c   : > { %s774_s20 = sshll.u32 %s1161_s19, 6  ;;  %s297_s22 = scalar_lea.sflag [#allocation3], %s1161_s19 }
  0x2d   : > { %s296_s21 = scalar_lea.vmem [#allocation2], %s774_s20 }
  0x2e   : > { %309 = vst [vmem:[%s296_s21] sm:$0xff] %v775_v8 }
  0x2f   : > { %311 = vst [vmem:[%s296_s21 + $0x8] sm:$0xff] %v776_v9 }
  0x30   : > { %313 = vst [vmem:[%s296_s21 + $0x10] sm:$0xff] %v777_v10 }
  0x31   : > { %315 = vst [vmem:[%s296_s21 + $0x18] sm:$0xff] %v778_v11 }
  0x32   : > { %317 = vst [vmem:[%s296_s21 + $0x20] sm:$0xff] %v779_v12 }
  0x33   : > { %319 = vst [vmem:[%s296_s21 + $0x28] sm:$0xff] %v780_v13 }
  0x34   : > { %321 = vst [vmem:[%s296_s21 + $0x30] sm:$0xff] %v781_v14 }
  0x35   : > { %323 = vst [vmem:[%s296_s21 + $0x38] sm:$0xff] %v782_v15 }
  0x36   : > { %329 = vsyncadd %s297_s22, 1024 }
  0x37 PF: > { %p330_p8 = scmp.lt.s32.totalorder %s943_s29, 0  ;;  %s331_s23 = ssub.s32 0, %s943_s29 }
  0x38   : > { %s783_s24 = smin.u32 %s943_s29, %s331_s23 }
  0x39   : > { %s333_s25 = sand.u32 1, %s783_s24  }
  0x3a   : > { %s334_s26 = ssub.s32 0, %s333_s25 }
  0x3b   : > { %s1163_s26 = smov (!%p330_p8, %s334_s26), %s333_s25 }
  0x3c   : > { %p785_p9 = scmp.lt.s32.totalorder %s1163_s26, 0  ;;  %s340_s27 = sadd.s32 2, %s1163_s26 }
  0x3e   : > { %s1165_s27 = smov (!%p785_p9, %s340_s27), %s1163_s26 }
  0x3f   : > { %s786_s0 = sshll.u32 %s1165_s27, 6  ;;  %s344_s8 = scalar_lea.sflag [#allocation3], %s1165_s27 }
  0x40   : > { %s991_s30 = scalar_lea.vmem [#allocation2], %s786_s0 }
  0x41   : > { %879 = dma.done.wait %s344_s8, 1024 }
  0x42   : > { %880 = vsyncadd %s344_s8, 4294966272  ;;  %v886_v16 = vmov 1   ;;  %v887_v17 = vmov 0   ;;  %v888_v18 = vmov 2   ;;  %v358_v19 = vld [vmem:[%s951_s10] sm:$0xff]  ;;  %v359_v20 = vld [vmem:[%s951_s10 + $0x8] sm:$0xff] }
  0x43   : > { %833 = vset.pattern.permute.xlu1 %v886_v16  ;;  %832 = vset.pattern.permute.xlu0 %v887_v17  ;;  %vm360_vm0 = vcmp.gt.f32.partialorder %v358_v19, 0.5  ;;  %vm361_vm1 = vcmp.gt.f32.partialorder %v359_v20, 0.5  ;;  %v889_v23 = vmov 3   ;;  %v890_v24 = vmov 5   ;;  %s996_s10 = sld [smem:[#allocation5 + %s943_s29]]  ;;  %v420_v49 = vld [vmem:[%s991_s30 + $0x1f] sm:$0xff] }
  0x44   : > { %834 = vset.pattern.permute.xlu2 %v888_v18  ;;  %v362_v21 = vsel %vm360_vm0, 1, %v887_v17  ;;  %v363_v22 = vsel %vm361_vm1, 1, %v887_v17  ;;  %v891_v25 = vmov 6   ;;  %v892_v26 = vmov 7   ;;  %v849_v37 = vld [vmem:[%s1150_s2] ss:$0 sm:$0xff] }
  0x45   : > { %385 = vperm.xlu1 %833, %v362_v21   ;;  %365 = vperm.xlu0 %832, %v362_v21   ;;  %v893_v27 = vmov 8   ;;  %v848_v41 = vld [vmem:[%s1151_s3] ss:$0 sm:$0xff]  ;;  %v847_v46 = vld [vmem:[%s1150_s2 + $0x1] ss:$0 sm:$0xff]  ;;  %v419_v4 = vld [vmem:[%s991_s30 + $0x17] sm:$0xff] }
  0x46   : > { %405 = vperm.xlu2 %834, %v362_v21   ;;  %v846_v50 = vld [vmem:[%s1150_s2 + $0x2] ss:$0 sm:$0xff]  ;;  %v852_v52 = vld [vmem:[%s1150_s2 + $0x3] ss:$0 sm:$0xff]  ;;  %v853_v63 = vld [vmem:[%s1150_s2 + $0x4] ss:$0 sm:$0xff] }
  0x47   : > { %v438_v1 = vld [vmem:[%s991_s30 + $0x20] sm:$0xff]  ;;  %v626_v5 = vld [vmem:[%s1152_s4 + $0x78] sm:$0xff]  ;;  %v625_v6 = vld [vmem:[%s1152_s4 + $0x70] sm:$0xff] }
  0x48   : > { %799 = vmatpush.msra.mxu1 %v626_v5  ;;  %631 = vmatpush.msra.mxu0 %v626_v5  ;;  %v1043_v11 = vld [vmem:[%s1150_s2 + $0x5] ss:$0 sm:$0xff]  ;;  %v442_v13 = vmul.f32 %v853_v63, %v438_v1  ;;  %v624_v16 = vld [vmem:[%s1152_s4 + $0x68] sm:$0xff]  ;;  %v1053_v17 = vld [vmem:[%s1150_s2 + $0x6] ss:$0 sm:$0xff] }
  0x49   : > { %s353_s9 = ssub.s32 23, %s996_s10  ;;  %s379_s12 = ssub.s32 24, %s996_s10  ;;  %v446_v14 = vld [vmem:[%s991_s30 + $0x21] sm:$0xff] }
  0x4a   : > { %s354_s11 = scalar_lea.vmem %s991_s30, %s353_s9 [#allocation2]  ;;  %s399_s14 = ssub.s32 25, %s996_s10  ;;  %v1059_v19 = vld [vmem:[%s1150_s2 + $0x7] ss:$0 sm:$0xff]  ;;  %800 = vmatpush.msra.mxu1 %v625_v6  ;;  %632 = vmatpush.msra.mxu0 %v625_v6 }
  0x4b   : > { %v356_v34 = vld [vmem:[%s354_s11 + $0x8] sm:$0xff]  ;;  %s380_s16 = scalar_lea.vmem %s991_s30, %s379_s12 [#allocation2]  ;;  %s400_s17 = scalar_lea.vmem %s991_s30, %s399_s14 [#allocation2]  ;;  %v355_v42 = vld [vmem:[%s354_s11] sm:$0xff] }
  0x4c   : > { %v382_v39 = vld [vmem:[%s380_s16 + $0x8] sm:$0xff]  ;;  %v381_v56 = vld [vmem:[%s380_s16] sm:$0xff]  ;;  %s1030_s0 = scalar_lea.vmem %s991_s30, %s996_s10 [#allocation2]  ;;  %801 = vmatpush.msra.mxu1 %v624_v16  ;;  %633 = vmatpush.msra.mxu0 %v624_v16 }
  0x4d   : > { %388 = vperm.xlu1 %833, %v363_v22   ;;  %368 = vperm.xlu0 %832, %v363_v22   ;;  %v402_v45 = vld [vmem:[%s400_s17 + $0x8] sm:$0xff]  ;;  %v401_v60 = vld [vmem:[%s400_s17] sm:$0xff] }
  0x4e   : > { %408 = vperm.xlu2 %834, %v363_v22   ;;  %v790_v8 = vld [vmem:[%s1030_s0 + $0x20] sm:$0xff] }
  0x4f   : > { %v788_v15 = vld [vmem:[%s1030_s0 + $0x1f] sm:$0xff] }
  0x55   : > { %836 = vset.pattern.permute.xlu1 %v889_v23  ;;  %835 = vset.pattern.permute.xlu0 %v889_v23  ;;  %v792_v23 = vld [vmem:[%s1030_s0 + $0x21] sm:$0xff] }
  0x56   : > { %426 = vperm.xlu1 %836, %v363_v22   ;;  %423 = vperm.xlu0 %835, %v362_v21  }
  0x57   : > { %837 = vset.pattern.permute.xlu2 %v890_v24 }
  0x58   : > { %449 = vperm.xlu2 %837, %v362_v21  }
  0x5e   : > { %838 = vset.pattern.permute.xlu1 %v890_v24  ;;  %840 = vset.pattern.permute.xlu0 %v891_v25  ;;  %v623_v24 = vld [vmem:[%s1152_s4 + $0x60] sm:$0xff] }
  0x5f   : > { %452 = vperm.xlu1 %838, %v363_v22   ;;  %472 = vperm.xlu0 %840, %v363_v22  }
  0x60   : > { %839 = vset.pattern.permute.xlu2 %v891_v25  ;;  %802 = vmatpush.msra.mxu1 %v623_v24 }
  0x61   : > { %469 = vperm.xlu2 %839, %v362_v21   ;;  %634 = vmatpush.msra.mxu0 %v623_v24 }
  0x67   : > { %841 = vset.pattern.permute.xlu1 %v892_v26  ;;  %845 = vset.pattern.permute.xlu0 %v893_v27 }
  0x68   : > { %489 = vperm.xlu1 %841, %v362_v21  }
  0x69   : > { %842 = vset.pattern.permute.xlu2 %v892_v26 }
  0x6a   : > { %492 = vperm.xlu2 %842, %v363_v22  }
  0x70   : > { %843 = vset.pattern.permute.xlu1 %v893_v27 }
  0x71   : > { %509 = vperm.xlu1 %843, %v362_v21  }
  0x72   : > { %844 = vset.pattern.permute.xlu2 %v893_v27 }
  0x73   : > { %512 = vperm.xlu2 %844, %v363_v22  }
  0xa0   : > { %v406_v28 = vpop.permute.xlu2 %405 }
  0xa1   : > { %vm410_vm8 = vcmp.eq.s32.totalorder %v406_v28, 1 }
  0xa2   : > { %v412_v7 = vsel %vm410_vm8, %v401_v60, 0.0 }
  0xa3   : > { %v415_v25 = vmul.f32 %v846_v50, %v412_v7  ;;  %v614_v7 = vld [vmem:[%s1152_s4 + $0x18] sm:$0xff] }
  0xa8   : > { %v409_v29 = vpop.permute.xlu2 %408 }
  0xa9   : > { %vm411_vm5 = vcmp.eq.s32.totalorder %v409_v29, 1  ;;  %v437_v29 = vld [vmem:[%s991_s30 + $0x18] sm:$0xff] }
  0xaa   : > { %v413_v54 = vsel %vm411_vm5, %v402_v45, 0.0 }
  0xab   : > { %v416_v61 = vmul.f32 %v846_v50, %v413_v54 }
  0xb2   : > { %v998_v30 = vpop.permute.xlu2 %449 }
  0xb3   : > { %vm454_vm14 = vcmp.eq.s32.totalorder %v998_v30, 1  ;;  %v619_v30 = vld [vmem:[%s1152_s4 + $0x40] sm:$0xff] }
  0xb7   : > { %v386_v31 = vpop.permute.xlu1 %385  ;;  %v366_v32 = vpop.permute.xlu0 %365 }
  0xb8   : > { %vm370_vm4 = vcmp.eq.s32.totalorder %v366_v32, 1  ;;  %vm390_vm7 = vcmp.eq.s32.totalorder %v386_v31, 1 }
  0xb9   : > { %v372_v48 = vsel %vm370_vm4, %v355_v42, 0.0  ;;  %v392_v0 = vsel %vm390_vm7, %v381_v56, 0.0  ;;  %v621_v42 = vld [vmem:[%s1152_s4 + $0x50] sm:$0xff]  ;;  %v618_v56 = vld [vmem:[%s1152_s4 + $0x38] sm:$0xff] }
  0xba   : > { %v375_v57 = vmul.f32 %v849_v37, %v372_v48  ;;  %v395_v10 = vmul.f32 %v847_v46, %v392_v0  ;;  %v620_v48 = vld [vmem:[%s1152_s4 + $0x48] sm:$0xff] }
  0xbb   : > { %v1001_v33 = vpop.permute.xlu2 %469  ;;  %v616_v0 = vld [vmem:[%s1152_s4 + $0x28] sm:$0xff] }
  0xbc   : > { %v377_v2 = vadd.f32 %v848_v41, %v375_v57  ;;  %vm474_vm15 = vcmp.eq.s32.totalorder %v1001_v33, 1 }
  0xbe   : > { %v397_v22 = vadd.f32 %v395_v10, %v377_v2 }
  0xbf   : > { %v389_v35 = vpop.permute.xlu1 %388  ;;  %v369_v36 = vpop.permute.xlu0 %368 }
  0xc0   : > { %vm371_vm2 = vcmp.eq.s32.totalorder %v369_v36, 1  ;;  %vm391_vm3 = vcmp.eq.s32.totalorder %v389_v35, 1  ;;  %v1072_v36 = vld [vmem:[%s1150_s2 + $0x8] ss:$0 sm:$0xff] }
  0xc1   : > { %v373_v38 = vsel %vm371_vm2, %v356_v34, 0.0  ;;  %v393_v43 = vsel %vm391_vm3, %v382_v39, 0.0  ;;  %v417_v39 = vadd.f32 %v415_v25, %v397_v22 }
  0xc2   : > { %v376_v40 = vmul.f32 %v849_v37, %v373_v38  ;;  %v396_v51 = vmul.f32 %v847_v46, %v393_v43  ;;  %v622_v37 = vld [vmem:[%s1152_s4 + $0x58] sm:$0xff]  ;;  %v441_v43 = vmul.f32 %v853_v63, %v437_v29 }
  0xc3   : > { %803 = vmatpush.msra.mxu1 %v622_v37  ;;  %635 = vmatpush.msra.mxu0 %v622_v37 }
  0xc4   : > { %v493_v44 = vpop.permute.xlu2 %492  ;;  %v378_v47 = vadd.f32 %v848_v41, %v376_v40 }
  0xc5   : > { %vm495_vm10 = vcmp.eq.s32.totalorder %v493_v44, 1  ;;  %v445_v44 = vld [vmem:[%s991_s30 + $0x19] sm:$0xff]  ;;  %804 = vmatpush.msra.mxu1 %v621_v42  ;;  %636 = vmatpush.msra.mxu0 %v621_v42 }
  0xc6   : > { %v398_v58 = vadd.f32 %v396_v51, %v378_v47  ;;  %v497_v26 = vsel %vm495_vm10, %v790_v8, 0.0 }
  0xc7   : > { %v500_v40 = vmul.f32 %v1059_v19, %v497_v26  ;;  %805 = vmatpush.msra.mxu1 %v620_v48  ;;  %637 = vmatpush.msra.mxu0 %v620_v48 }
  0xc8   : > { %v427_v53 = vpop.permute.xlu1 %426  ;;  %v424_v55 = vpop.permute.xlu0 %423  ;;  %v418_v3 = vadd.f32 %v416_v61, %v398_v58 }
  0xc9   : > { %vm429_vm6 = vcmp.eq.s32.totalorder %v427_v53, 1  ;;  %vm428_vm9 = vcmp.eq.s32.totalorder %v424_v55, 1  ;;  %v789_v55 = vld [vmem:[%s1030_s0 + $0x18] sm:$0xff]  ;;  %806 = vmatpush.msra.mxu1 %v619_v30  ;;  %638 = vmatpush.msra.mxu0 %v619_v30 }
  0xca   : > { %v431_v59 = vsel %vm429_vm6, %v420_v49, 0.0  ;;  %v430_v18 = vsel %vm428_vm9, %v419_v4, 0.0  ;;  %v787_v49 = vld [vmem:[%s1030_s0 + $0x17] sm:$0xff]  ;;  %v615_v4 = vld [vmem:[%s1152_s4 + $0x20] sm:$0xff] }
  0xcb   : > { %v434_v62 = vmul.f32 %v852_v52, %v431_v59  ;;  %v433_v31 = vmul.f32 %v852_v52, %v430_v18  ;;  %v456_v52 = vsel %vm454_vm14, %v445_v44, 0.0  ;;  %v476_v57 = vsel %vm474_vm15, %v787_v49, 0.0  ;;  %v617_v59 = vld [vmem:[%s1152_s4 + $0x30] sm:$0xff]  ;;  %807 = vmatpush.msra.mxu1 %v618_v56  ;;  %639 = vmatpush.msra.mxu0 %v618_v56 }
  0xcc   : > { %v459_v33 = vmul.f32 %v1043_v11, %v456_v52  ;;  %v479_v61 = vmul.f32 %v1053_v17, %v476_v57 }
  0xcd   : > { %v513_v9 = vpop.permute.xlu2 %512  ;;  %v436_v12 = vadd.f32 %v434_v62, %v418_v3  ;;  %v435_v45 = vadd.f32 %v433_v31, %v417_v39  ;;  %808 = vmatpush.msra.mxu1 %v617_v59  ;;  %640 = vmatpush.msra.mxu0 %v617_v59  ;;  %v791_v3 = vld [vmem:[%s1030_s0 + $0x19] sm:$0xff] }
  0xce   : > { %vm515_vm13 = vcmp.eq.s32.totalorder %v513_v9, 1 }
  0xcf   : > { %v444_v32 = vadd.f32 %v442_v13, %v436_v12  ;;  %v517_v38 = vsel %vm515_vm13, %v792_v23, 0.0  ;;  %v443_v53 = vadd.f32 %v441_v43, %v435_v45  ;;  %809 = vmatpush.msra.mxu1 %v616_v0  ;;  %641 = vmatpush.msra.mxu0 %v616_v0  ;;  %v613_v13 = vld [vmem:[%s1152_s4 + $0x10] sm:$0xff] }
  0xd0   : > { %v520_v47 = vmul.f32 %v1072_v36, %v517_v38 }
  0xd1   : > { %v453_v20 = vpop.permute.xlu1 %452  ;;  %v473_v21 = vpop.permute.xlu0 %472  ;;  %v461_v63 = vadd.f32 %v459_v33, %v443_v53  ;;  %810 = vmatpush.msra.mxu1 %v615_v4  ;;  %642 = vmatpush.msra.mxu0 %v615_v4 }
  0xd2   : > { %vm455_vm11 = vcmp.eq.s32.totalorder %v453_v20, 1  ;;  %vm475_vm12 = vcmp.eq.s32.totalorder %v473_v21, 1  ;;  %v611_v20 = vld [vmem:[%s1152_s4] sm:$0xff] }
  0xd3   : > { %v457_v27 = vsel %vm455_vm11, %v446_v14, 0.0  ;;  %v477_v28 = vsel %vm475_vm12, %v788_v15, 0.0  ;;  %v481_v6 = vadd.f32 %v479_v61, %v461_v63  ;;  %811 = vmatpush.msra.mxu1 %v614_v7  ;;  %643 = vmatpush.msra.mxu0 %v614_v7 }
  0xd4   : > { %v460_v34 = vmul.f32 %v1043_v11, %v457_v27  ;;  %v480_v35 = vmul.f32 %v1053_v17, %v477_v28  ;;  %v612_v17 = vld [vmem:[%s1152_s4 + $0x8] sm:$0xff] }
  0xd5   : > { %812 = vmatpush.msra.mxu1 %v613_v13  ;;  %644 = vmatpush.msra.mxu0 %v613_v13 }
  0xd6   : > { %v462_v41 = vadd.f32 %v460_v34, %v444_v32 }
  0xd7   : > { %813 = vmatpush.msra.mxu1 %v612_v17  ;;  %645 = vmatpush.msra.mxu0 %v612_v17 }
  0xd8   : > { %v482_v46 = vadd.f32 %v480_v35, %v462_v41 }
  0xd9   : > { %814 = vmatpush.msra.mxu1 %v611_v20  ;;  %646 = vmatpush.msra.mxu0 %v611_v20 }
  0xda   : > { %v502_v50 = vadd.f32 %v500_v40, %v482_v46  ;;  %v490_v51 = vpop.permute.xlu1 %489 }
  0xdb   : > { %vm494_vm0 = vcmp.eq.s32.totalorder %v490_v51, 1 }
  0xdc   : > { %v1092_v54 = vadd.f32 %v520_v47, %v502_v50  ;;  %v496_v60 = vsel %vm494_vm0, %v789_v55, 0.0 }
  0xdd   : > { %v499_v2 = vmul.f32 %v1059_v19, %v496_v60 }
  0xde   : > { %v1100_v58 = vmul.f32 0.70710677, %v1092_v54 }
  0xdf   : > { %v501_v11 = vadd.f32 %v499_v2, %v481_v6 }
  0xe0   : > { %v567_v62 = vmul.f32 %v1100_v58, %v1100_v58 }
  0xe2   : > { %v568_v1 = vmin.f32 %v567_v62, 16.0 }
  0xe3   : > { %v510_v5 = vpop.permute.xlu1 %509 }
  0xe4   : > { %vm514_vm1 = vcmp.eq.s32.totalorder %v510_v5, 1  ;;  %v569_v8 = vmul.f32 2.1237322e-06, %v568_v1  ;;  %v580_v9 = vmul.f32 3.8918573e-05, %v568_v1 }
  0xe5   : > { %v516_v10 = vsel %vm514_vm1, %v791_v3, 0.0 }
  0xe6   : > { %v519_v12 = vmul.f32 %v1072_v36, %v516_v10  ;;  %v570_v14 = vadd.f32 0.00028619796, %v569_v8  ;;  %v581_v15 = vadd.f32 0.001143296, %v580_v9  ;;  %v524_v10 = vmul.f32 0.5, %v1092_v54 }
  0xe8   : > { %v1123_v16 = vadd.f32 %v519_v12, %v501_v11  ;;  %v571_v18 = vmul.f32 %v570_v14, %v568_v1  ;;  %v582_v19 = vmul.f32 %v581_v15, %v568_v1 }
  0xea   : > { %v1132_v21 = vmul.f32 0.70710677, %v1123_v16  ;;  %v572_v22 = vadd.f32 0.0036580483, %v571_v18  ;;  %v583_v23 = vadd.f32 0.014752088, %v582_v19 }
  0xec   : > { %v527_v24 = vmul.f32 %v1132_v21, %v1132_v21  ;;  %v584_v25 = vmul.f32 %v583_v23, %v568_v1  ;;  %v573_v27 = vmul.f32 %v572_v22, %v568_v1 }
  0xee   : > { %v528_v26 = vmin.f32 %v527_v24, 16.0  ;;  %v585_v28 = vadd.f32 0.112945676, %v584_v25  ;;  %v574_v34 = vadd.f32 0.05243302, %v573_v27  ;;  %v523_v25 = vmul.f32 0.5, %v1123_v16 }
  0xf0   : > { %v586_v29 = vmul.f32 %v585_v28, %v568_v1  ;;  %v529_v31 = vmul.f32 2.1237322e-06, %v528_v26  ;;  %v540_v32 = vmul.f32 3.8918573e-05, %v528_v26  ;;  %v575_v41 = vmul.f32 %v574_v34, %v568_v1  ;;  %v856_v28 = vld [vmem:[%s1153_s5] ss:$0 sm:$0xff] }
  0xf2   : > { %v587_v35 = vadd.f32 0.4994258, %v586_v29  ;;  %v530_v36 = vadd.f32 0.00028619796, %v529_v31  ;;  %v541_v37 = vadd.f32 0.001143296, %v540_v32 }
  0xf3   : > { %v576_v46 = vadd.f32 0.18741608, %v575_v41 }
  0xf4   : > { %v588_v38 = vmul.f32 %v587_v35, %v568_v1  ;;  %v531_v39 = vmul.f32 %v530_v36, %v528_v26  ;;  %v542_v40 = vmul.f32 %v541_v37, %v528_v26 }
  0xf5   : > { %v577_v51 = vmul.f32 %v576_v46, %v568_v1 }
  0xf6   : > { %v589_v42 = vadd.f32 1.0, %v588_v38  ;;  %v543_v43 = vadd.f32 0.014752088, %v542_v40  ;;  %v532_v44 = vadd.f32 0.0036580483, %v531_v39 }
  0xf7   : > { %v578_v57 = vadd.f32 1.1283791, %v577_v51 }
  0xf8   : > { %857 = vrcp.f32 %v589_v42  ;;  %v544_v45 = vmul.f32 %v543_v43, %v528_v26  ;;  %v533_v48 = vmul.f32 %v532_v44, %v528_v26  ;;  %v601_v33 = vand.u32 2147483648, %v589_v42 }
  0xf9   : > { %v599_v60 = vand.u32 2147483647, %v589_v42  ;;  %vm595_vm3 = vweird.f32 %v589_v42  ;;  %v579_v2 = vmul.f32 %v578_v57, %v1100_v58 }
  0xfa   : > { %v545_v47 = vadd.f32 0.112945676, %v544_v45  ;;  %v534_v53 = vadd.f32 0.05243302, %v533_v48  ;;  %v602_v0 = vor.u32 1.1754944e-38, %v601_v33 }
  0xfb   : > { %vm600_vm5 = vcmp.eq.f32.partialorder %v599_v60, 8.507059e+37 }
  0xfc   : > { %v546_v49 = vmul.f32 %v545_v47, %v528_v26  ;;  %v535_v62 = vmul.f32 %v534_v53, %v528_v26 }
  0xfe   : > { %v858_v50 = vpop.eup %857  ;;  %v547_v52 = vadd.f32 0.4994258, %v546_v49  ;;  %v536_v4 = vadd.f32 0.18741608, %v535_v62 }
  0xff   : > { %v591_v30 = vmul.f32 %v858_v50, %v589_v42  ;;  %vm596_vm2 = vweird.f32 %v858_v50 }
 0x100   : > { %v548_v56 = vmul.f32 %v547_v52, %v528_v26  ;;  %vm597_vm4 = vmor %vm595_vm3, %vm596_vm2  ;;  %v537_v8 = vmul.f32 %v536_v4, %v528_v26 }
 0x101   : > { %v592_v55 = vsub.f32 1.0, %v591_v30 }
 0x102   : > { %v549_v61 = vadd.f32 1.0, %v548_v56  ;;  %v538_v15 = vadd.f32 1.1283791, %v537_v8 }
 0x103   : > { %v593_v59 = vmul.f32 %v858_v50, %v592_v55 }
 0x104   : > { %859 = vrcp.f32 %v549_v61  ;;  %v561_v14 = vand.u32 2147483648, %v549_v61  ;;  %v559_v18 = vand.u32 2147483647, %v549_v61  ;;  %vm555_vm7 = vweird.f32 %v549_v61 }
 0x105   : > { %v594_v63 = vadd.f32 %v858_v50, %v593_v59  ;;  %v539_v20 = vmul.f32 %v538_v15, %v1132_v21 }
 0x106   : > { %v562_v19 = vor.u32 1.1754944e-38, %v561_v14  ;;  %vm560_vm9 = vcmp.eq.f32.partialorder %v559_v18, 8.507059e+37 }
 0x107   : > { %v598_v1 = vsel %vm597_vm4, %v858_v50, %v594_v63 }
 0x108   : > { %v603_v3 = vsel %vm600_vm5, %v602_v0, %v598_v1 }
 0x109   : > { %v604_v5 = vmul.f32 %v603_v3, %v579_v2 }
 0x10a   : > { %v860_v6 = vpop.eup %859 }
 0x10b   : > { %v794_v7 = vclamps-f32 %v604_v5, 1.0  ;;  %v551_v9 = vmul.f32 %v860_v6, %v549_v61  ;;  %vm556_vm6 = vweird.f32 %v860_v6 }
 0x10c   : > { %vm557_vm8 = vmor %vm555_vm7, %vm556_vm6 }
 0x10d   : > { %v608_v11 = vadd.f32 1.0, %v794_v7  ;;  %v552_v12 = vsub.f32 1.0, %v551_v9 }
 0x10f   : > { %v610_v13 = vmul.f32 %v608_v11, %v524_v10  ;;  %v553_v17 = vmul.f32 %v860_v6, %v552_v12 }
 0x111   : > { %650 = vmatmul.f32.vlgmr.msra.gmra.mxu1 %v610_v13  ;;  %v554_v58 = vadd.f32 %v860_v6, %v553_v17 }
 0x113   : > { %v558_v22 = vsel %vm557_vm8, %v860_v6, %v554_v58 }
 0x114   : > { %v563_v54 = vsel %vm560_vm9, %v562_v19, %v558_v22 }
 0x115   : > { %v564_v23 = vmul.f32 %v563_v54, %v539_v20 }
 0x117   : > { %v793_v24 = vclamps-f32 %v564_v23, 1.0 }
 0x119   : > { %v607_v26 = vadd.f32 1.0, %v793_v24 }
 0x11b   : > { %v609_v27 = vmul.f32 %v607_v26, %v523_v25 }
 0x11d   : > { %647 = vmatmul.f32.vlgmr.msra.gmra.mxu0 %v609_v27 }
 0x18e   : > { %v651_v29 = vpop.f32.mrf.mxu1 }
 0x18f   : > { %v652_v31 = vadd.f32 %v856_v28, %v651_v29 }
 0x191   : > { %655 = vst [vmem:[%s956_s13 + $0x8] sm:$0xff] %v652_v31 }
 0x19a   : > { %v648_v32 = vpop.f32.mrf.mxu0 }
 0x19b   : > { %v649_v21 = vadd.f32 %v856_v28, %v648_v32 }
 0x19d   : > { %654 = vst [vmem:[%s956_s13] sm:$0xff] %v649_v21 }
 0x19e PF: > { %s25_s28 = sadd.s32 1, %s883_s28  }
 0x19f   : > { %p22_p10 = scmp.ge.s32.totalorder %s25_s28, 44  }
 0x1a1   :  { %24 = sbr.rel (!%p22_p10) target bundleno = 7 (0x7), region = 137 }
 0x1a6   :  { %678 = vsyncmov [#allocation3] }
 0x1a9   :  { %s679_s8 = vpop.sfrf %678 }
 0x1aa   :  { %p797_p11 = scmp.ne.s32.totalorder %s679_s8, 0 }
 0x1ac   :  { %683 = shalt.err (%p797_p11)  }
 0x1ad   :  { %685 = vsyncmov [#allocation3 + $0x1] }
 0x1b0   :  { %s686_s9 = vpop.sfrf %685 }
 0x1b1   :  { %p798_p12 = scmp.ne.s32.totalorder %s686_s9, 0 }
 0x1b3   :  { %690 = shalt.err (%p798_p12)  }

// kernel: conv_ffn_forward.2
= control target key start
LH: loop header
LB: loop body
LE: loop exit
PB: predicated region body
PF: predicated region fallthrough
CT: control target
= control target key end

     0   :  { %s1004_s12 = smov 0   ;;  %s1006_s13 = smov 0   ;;  %s1230_s0 = inlined_call_operand.vmem [shape: f32[672,32], index: 0, kind: input, shape index: {}]   ;;  %s1231_s1 = inlined_call_operand.vmem [shape: f32[32,128], index: 1, kind: input, shape index: {}]   ;;  %s1232_s2 = inlined_call_operand.vmem [shape: f32[1,128], index: 2, kind: input, shape index: {}]   ;;  %s1233_s3 = inlined_call_operand.vmem [shape: f32[1344,128], index: 3, kind: output, shape index: {}]  }
   0x1   :  { %s1008_s14 = smov 0  }
   0x2 LB: > { %s32_s15 = sadd.s32 1, %s978_s13  ;;  %p876_p0 = scmp.ge.s32.totalorder %s982_s14, 1  ;;  %s982_s14 = sphi %s1008_s14, %s13_s14   ;;  %s978_s13 = sphi %s1006_s13, %s1235_s13   ;;  %s974_s12 = sphi %s1004_s12, %s1234_s12  }
   0x3   : > { %p34_p1 = scmp.ge.s32.totalorder %s32_s15, 2  ;;  %p190_p2 = scmp.lt.s32.totalorder %s982_s14, 3 }
   0x5   : > { %s1237_s15 = smov (%p34_p1, %s32_s15), 0  ;;  %p191_p3 = pnand %p876_p0, %p190_p2 }
   0x6   : > { %s232_s20 = smul.u32 (!%p191_p3), 42, %s974_s12  ;;  %s253_s29 = sadd.s32 (!%p191_p3), 1, %s974_s12 }
   0x7   : > { %194 = sbr.rel (%p191_p3) target bundleno = 236 (0xec), region = 32 }
   0x8   : > { %p233_p4 = scmp.lt.s32.totalorder (!%p191_p3), %s232_s20, 83  ;;  %s254_s30 = smul.u32 (!%p191_p3), 42, %s253_s29 }
   0xa   : > { %p255_p5 = scmp.lt.s32.totalorder (!%p191_p3), %s254_s30, 167 }
   0xc   : > { %v401_v0 = vld [vmem:[%s1231_s1 + $0x18] sm:$0xff]  ;;  %v400_v1 = vld [vmem:[%s1231_s1 + $0x10] sm:$0xff]  ;;  %v399_v2 = vld [vmem:[%s1231_s1 + $0x8] sm:$0xff]  ;;  %s1239_s20 = smov (!%p233_p4, %s232_s20), 83  ;;  %vm402_vm0 = vcmask 261120   ;;  %s1241_s30 = smov (!%p255_p5, %s254_s30), 167 }
   0xd   : > { %924 = vmatpush.msra.mxu2 %v401_v0  ;;  %923 = vmatpush.msra.mxu1 %v401_v0  ;;  %v398_v3 = vld [vmem:[%s1231_s1] sm:$0xff]  ;;  %s877_s25 = sshll.u32 %s1239_s20, 3  ;;  %s878_s4 = sshll.u32 %s1241_s30, 3 }
   0xe   : > { %925 = vmatpush.msra.mxu3 %v401_v0  ;;  %541 = vmatpush.msra.mxu0 %v401_v0  ;;  %s1040_s28 = scalar_lea.vmem %s1230_s0, %s877_s25  ;;  %v1130_v46 = vld [vmem:[%s1232_s2] ss:$0 sm:$0xff]  ;;  %s1135_s9 = scalar_lea.vmem %s1233_s3, %s878_s4 }
   0xf   : > { %927 = vmatpush.msra.mxu2 %v400_v1  ;;  %926 = vmatpush.msra.mxu1 %v400_v1  ;;  %v377_v4 = vld [vmem:[%s1040_s28 + $0xa8] sm:$0xff]  ;;  %v366_v5 = vld [vmem:[%s1040_s28 + $0x50] sm:$0xff]  ;;  %v388_v6 = vld [vmem:[%s1040_s28 + $0x100] sm:$0xff] }
  0x10   : > { %928 = vmatpush.msra.mxu3 %v400_v1  ;;  %542 = vmatpush.msra.mxu0 %v400_v1  ;;  %v356_v7 = vld [vmem:[%s1040_s28] sm:$0xff]  ;;  %v378_v8 = vld [vmem:[%s1040_s28 + $0xb0] sm:$0xff]  ;;  %v367_v9 = vld [vmem:[%s1040_s28 + $0x58] sm:$0xff] }
  0x11   : > { %930 = vmatpush.msra.mxu2 %v399_v2  ;;  %929 = vmatpush.msra.mxu1 %v399_v2  ;;  %v389_v10 = vld [vmem:[%s1040_s28 + $0x108] sm:$0xff]  ;;  %v379_v12 = vld [vmem:[%s1040_s28 + $0xb8] sm:$0xff]  ;;  %v368_v13 = vld [vmem:[%s1040_s28 + $0x60] sm:$0xff] }
  0x12   : > { %931 = vmatpush.msra.mxu3 %v399_v2  ;;  %543 = vmatpush.msra.mxu0 %v399_v2  ;;  %v357_v11 = vld [vmem:[%s1040_s28 + $0x8] sm:$0xff]  ;;  %v390_v14 = vld [vmem:[%s1040_s28 + $0x110] sm:$0xff]  ;;  %v380_v16 = vld [vmem:[%s1040_s28 + $0xc0] sm:$0xff] }
  0x13   : > { %933 = vmatpush.msra.mxu2 %v398_v3  ;;  %932 = vmatpush.msra.mxu1 %v398_v3  ;;  %v358_v15 = vld [vmem:[%s1040_s28 + $0x10] sm:$0xff]  ;;  %v369_v17 = vld [vmem:[%s1040_s28 + $0x68] sm:$0xff]  ;;  %v391_v18 = vld [vmem:[%s1040_s28 + $0x118] sm:$0xff] }
  0x14   : > { %934 = vmatpush.msra.mxu3 %v398_v3  ;;  %544 = vmatpush.msra.mxu0 %v398_v3  ;;  %v359_v19 = vld [vmem:[%s1040_s28 + $0x18] sm:$0xff]  ;;  %v381_v20 = vld [vmem:[%s1040_s28 + $0xc8] sm:$0xff]  ;;  %v370_v21 = vld [vmem:[%s1040_s28 + $0x70] sm:$0xff] }
  0x15   : > { %900 = vmatmul.msk.f32.vlgmr.msra.gmra.mxu2 %vm402_vm0, %v377_v4  ;;  %889 = vmatmul.msk.f32.vlgmr.msra.gmra.mxu1 %vm402_vm0, %v366_v5  ;;  %v392_v22 = vld [vmem:[%s1040_s28 + $0x120] sm:$0xff]  ;;  %v382_v24 = vld [vmem:[%s1040_s28 + $0xd0] sm:$0xff]  ;;  %v371_v25 = vld [vmem:[%s1040_s28 + $0x78] sm:$0xff] }
  0x16   : > { %911 = vmatmul.msk.f32.vlgmr.msra.gmra.mxu3 %vm402_vm0, %v388_v6  ;;  %879 = vmatmul.msk.f32.vlgmr.msra.gmra.mxu0 %vm402_vm0, %v356_v7  ;;  %v360_v23 = vld [vmem:[%s1040_s28 + $0x20] sm:$0xff]  ;;  %v393_v26 = vld [vmem:[%s1040_s28 + $0x128] sm:$0xff]  ;;  %v383_v28 = vld [vmem:[%s1040_s28 + $0xd8] sm:$0xff] }
  0x17   : > { %v361_v27 = vld [vmem:[%s1040_s28 + $0x28] sm:$0xff]  ;;  %v372_v29 = vld [vmem:[%s1040_s28 + $0x80] sm:$0xff]  ;;  %v394_v30 = vld [vmem:[%s1040_s28 + $0x130] sm:$0xff] }
  0x18   : > { %v362_v31 = vld [vmem:[%s1040_s28 + $0x30] sm:$0xff]  ;;  %v384_v32 = vld [vmem:[%s1040_s28 + $0xe0] sm:$0xff]  ;;  %v373_v33 = vld [vmem:[%s1040_s28 + $0x88] sm:$0xff] }
  0x19   : > { %v395_v34 = vld [vmem:[%s1040_s28 + $0x138] sm:$0xff]  ;;  %v385_v36 = vld [vmem:[%s1040_s28 + $0xe8] sm:$0xff]  ;;  %v374_v37 = vld [vmem:[%s1040_s28 + $0x90] sm:$0xff] }
  0x1a   : > { %v363_v35 = vld [vmem:[%s1040_s28 + $0x38] sm:$0xff]  ;;  %v396_v38 = vld [vmem:[%s1040_s28 + $0x140] sm:$0xff]  ;;  %v386_v40 = vld [vmem:[%s1040_s28 + $0xf0] sm:$0xff] }
  0x1b   : > { %v364_v39 = vld [vmem:[%s1040_s28 + $0x40] sm:$0xff]  ;;  %v375_v41 = vld [vmem:[%s1040_s28 + $0x98] sm:$0xff]  ;;  %v397_v42 = vld [vmem:[%s1040_s28 + $0x148] sm:$0xff] }
  0x1c   : > { %v365_v43 = vld [vmem:[%s1040_s28 + $0x48] sm:$0xff]  ;;  %v387_v44 = vld [vmem:[%s1040_s28 + $0xf8] sm:$0xff]  ;;  %v376_v45 = vld [vmem:[%s1040_s28 + $0xa0] sm:$0xff] }
  0x1d   : > { %901 = vmatmul.msk.f32.gmra.mxu2 %vm402_vm0, %v378_v8  ;;  %890 = vmatmul.msk.f32.gmra.mxu1 %vm402_vm0, %v367_v9 }
  0x1e   : > { %912 = vmatmul.msk.f32.gmra.mxu3 %vm402_vm0, %v389_v10  ;;  %880 = vmatmul.msk.f32.gmra.mxu0 %vm402_vm0, %v357_v11 }
  0x25   : > { %902 = vmatmul.msk.f32.gmra.mxu2 %vm402_vm0, %v379_v12  ;;  %891 = vmatmul.msk.f32.gmra.mxu1 %vm402_vm0, %v368_v13 }
  0x26   : > { %913 = vmatmul.msk.f32.gmra.mxu3 %vm402_vm0, %v390_v14  ;;  %881 = vmatmul.msk.f32.gmra.mxu0 %vm402_vm0, %v358_v15 }
  0x2d   : > { %903 = vmatmul.msk.f32.gmra.mxu2 %vm402_vm0, %v380_v16  ;;  %892 = vmatmul.msk.f32.gmra.mxu1 %vm402_vm0, %v369_v17 }
  0x2e   : > { %914 = vmatmul.msk.f32.gmra.mxu3 %vm402_vm0, %v391_v18  ;;  %882 = vmatmul.msk.f32.gmra.mxu0 %vm402_vm0, %v359_v19 }
  0x35   : > { %904 = vmatmul.msk.f32.gmra.mxu2 %vm402_vm0, %v381_v20  ;;  %893 = vmatmul.msk.f32.gmra.mxu1 %vm402_vm0, %v370_v21 }
  0x36   : > { %915 = vmatmul.msk.f32.gmra.mxu3 %vm402_vm0, %v392_v22  ;;  %883 = vmatmul.msk.f32.gmra.mxu0 %vm402_vm0, %v360_v23 }
  0x3d   : > { %905 = vmatmul.msk.f32.gmra.mxu2 %vm402_vm0, %v382_v24  ;;  %894 = vmatmul.msk.f32.gmra.mxu1 %vm402_vm0, %v371_v25 }
  0x3e   : > { %916 = vmatmul.msk.f32.gmra.mxu3 %vm402_vm0, %v393_v26  ;;  %884 = vmatmul.msk.f32.gmra.mxu0 %vm402_vm0, %v361_v27 }
  0x45   : > { %906 = vmatmul.msk.f32.gmra.mxu2 %vm402_vm0, %v383_v28  ;;  %895 = vmatmul.msk.f32.gmra.mxu1 %vm402_vm0, %v372_v29 }
  0x46   : > { %917 = vmatmul.msk.f32.gmra.mxu3 %vm402_vm0, %v394_v30  ;;  %885 = vmatmul.msk.f32.gmra.mxu0 %vm402_vm0, %v362_v31 }
  0x4d   : > { %907 = vmatmul.msk.f32.gmra.mxu2 %vm402_vm0, %v384_v32  ;;  %896 = vmatmul.msk.f32.gmra.mxu1 %vm402_vm0, %v373_v33 }
  0x4e   : > { %918 = vmatmul.msk.f32.gmra.mxu3 %vm402_vm0, %v395_v34  ;;  %886 = vmatmul.msk.f32.gmra.mxu0 %vm402_vm0, %v363_v35 }
  0x55   : > { %908 = vmatmul.msk.f32.gmra.mxu2 %vm402_vm0, %v385_v36  ;;  %897 = vmatmul.msk.f32.gmra.mxu1 %vm402_vm0, %v374_v37 }
  0x56   : > { %919 = vmatmul.msk.f32.gmra.mxu3 %vm402_vm0, %v396_v38  ;;  %887 = vmatmul.msk.f32.gmra.mxu0 %vm402_vm0, %v364_v39 }
  0x5d   : > { %909 = vmatmul.msk.f32.gmra.mxu2 %vm402_vm0, %v386_v40  ;;  %898 = vmatmul.msk.f32.gmra.mxu1 %vm402_vm0, %v375_v41 }
  0x5e   : > { %920 = vmatmul.msk.f32.gmra.mxu3 %vm402_vm0, %v397_v42  ;;  %888 = vmatmul.msk.f32.gmra.mxu0 %vm402_vm0, %v365_v43 }
  0x65   : > { %910 = vmatmul.msk.f32.gmra.mxu2 %vm402_vm0, %v387_v44  ;;  %899 = vmatmul.msk.f32.gmra.mxu1 %vm402_vm0, %v376_v45 }
  0x92   : > { %v576_v47 = vpop.f32.mrf.mxu1 }
  0x93   : > { %v682_v48 = vadd.f32 %v1130_v46, %v576_v47  ;;  %v546_v49 = vpop.f32.mrf.mxu0 }
  0x94   : > { %v672_v50 = vadd.f32 %v1130_v46, %v546_v49 }
  0x95   : > { %724 = vst [vmem:[%s1135_s9 + $0x50] sm:$0xff] %v682_v48 }
  0x96   : > { %714 = vst [vmem:[%s1135_s9] sm:$0xff] %v672_v50 }
  0x98   : > { %v609_v51 = vpop.f32.mrf.mxu2 }
  0x99   : > { %v693_v52 = vadd.f32 %v1130_v46, %v609_v51  ;;  %v642_v53 = vpop.f32.mrf.mxu3 }
  0x9a   : > { %v579_v54 = vpop.f32.mrf.mxu1  ;;  %v704_v55 = vadd.f32 %v1130_v46, %v642_v53 }
  0x9b   : > { %735 = vst [vmem:[%s1135_s9 + $0xa8] sm:$0xff] %v693_v52  ;;  %v683_v56 = vadd.f32 %v1130_v46, %v579_v54  ;;  %v549_v57 = vpop.f32.mrf.mxu0 }
  0x9c   : > { %746 = vst [vmem:[%s1135_s9 + $0x100] sm:$0xff] %v704_v55  ;;  %v673_v58 = vadd.f32 %v1130_v46, %v549_v57 }
  0x9d   : > { %725 = vst [vmem:[%s1135_s9 + $0x58] sm:$0xff] %v683_v56 }
  0x9e   : > { %715 = vst [vmem:[%s1135_s9 + $0x8] sm:$0xff] %v673_v58 }
  0xa0   : > { %v612_v59 = vpop.f32.mrf.mxu2 }
  0xa1   : > { %v694_v60 = vadd.f32 %v1130_v46, %v612_v59  ;;  %v645_v61 = vpop.f32.mrf.mxu3 }
  0xa2   : > { %v582_v62 = vpop.f32.mrf.mxu1  ;;  %v705_v63 = vadd.f32 %v1130_v46, %v645_v61 }
  0xa3   : > { %736 = vst [vmem:[%s1135_s9 + $0xb0] sm:$0xff] %v694_v60  ;;  %v684_v0 = vadd.f32 %v1130_v46, %v582_v62  ;;  %v552_v1 = vpop.f32.mrf.mxu0 }
  0xa4   : > { %747 = vst [vmem:[%s1135_s9 + $0x108] sm:$0xff] %v705_v63  ;;  %v674_v2 = vadd.f32 %v1130_v46, %v552_v1 }
  0xa5   : > { %726 = vst [vmem:[%s1135_s9 + $0x60] sm:$0xff] %v684_v0 }
  0xa6   : > { %716 = vst [vmem:[%s1135_s9 + $0x10] sm:$0xff] %v674_v2 }
  0xa8   : > { %v615_v3 = vpop.f32.mrf.mxu2 }
  0xa9   : > { %v695_v4 = vadd.f32 %v1130_v46, %v615_v3  ;;  %v648_v5 = vpop.f32.mrf.mxu3 }
  0xaa   : > { %v585_v6 = vpop.f32.mrf.mxu1  ;;  %v706_v7 = vadd.f32 %v1130_v46, %v648_v5 }
  0xab   : > { %737 = vst [vmem:[%s1135_s9 + $0xb8] sm:$0xff] %v695_v4  ;;  %v685_v8 = vadd.f32 %v1130_v46, %v585_v6  ;;  %v555_v9 = vpop.f32.mrf.mxu0 }
  0xac   : > { %748 = vst [vmem:[%s1135_s9 + $0x110] sm:$0xff] %v706_v7  ;;  %v675_v10 = vadd.f32 %v1130_v46, %v555_v9 }
  0xad   : > { %727 = vst [vmem:[%s1135_s9 + $0x68] sm:$0xff] %v685_v8 }
  0xae   : > { %717 = vst [vmem:[%s1135_s9 + $0x18] sm:$0xff] %v675_v10 }
  0xb0   : > { %v618_v11 = vpop.f32.mrf.mxu2 }
  0xb1   : > { %v696_v12 = vadd.f32 %v1130_v46, %v618_v11  ;;  %v651_v13 = vpop.f32.mrf.mxu3 }
  0xb2   : > { %v588_v14 = vpop.f32.mrf.mxu1  ;;  %v707_v15 = vadd.f32 %v1130_v46, %v651_v13 }
  0xb3   : > { %738 = vst [vmem:[%s1135_s9 + $0xc0] sm:$0xff] %v696_v12  ;;  %v686_v16 = vadd.f32 %v1130_v46, %v588_v14  ;;  %v558_v17 = vpop.f32.mrf.mxu0 }
  0xb4   : > { %749 = vst [vmem:[%s1135_s9 + $0x118] sm:$0xff] %v707_v15  ;;  %v676_v18 = vadd.f32 %v1130_v46, %v558_v17 }
  0xb5   : > { %728 = vst [vmem:[%s1135_s9 + $0x70] sm:$0xff] %v686_v16 }
  0xb6   : > { %718 = vst [vmem:[%s1135_s9 + $0x20] sm:$0xff] %v676_v18 }
  0xb8   : > { %v621_v19 = vpop.f32.mrf.mxu2 }
  0xb9   : > { %v697_v20 = vadd.f32 %v1130_v46, %v621_v19  ;;  %v654_v21 = vpop.f32.mrf.mxu3 }
  0xba   : > { %v591_v22 = vpop.f32.mrf.mxu1  ;;  %v708_v23 = vadd.f32 %v1130_v46, %v654_v21 }
  0xbb   : > { %739 = vst [vmem:[%s1135_s9 + $0xc8] sm:$0xff] %v697_v20  ;;  %v687_v24 = vadd.f32 %v1130_v46, %v591_v22  ;;  %v561_v25 = vpop.f32.mrf.mxu0 }
  0xbc   : > { %750 = vst [vmem:[%s1135_s9 + $0x120] sm:$0xff] %v708_v23  ;;  %v677_v26 = vadd.f32 %v1130_v46, %v561_v25 }
  0xbd   : > { %729 = vst [vmem:[%s1135_s9 + $0x78] sm:$0xff] %v687_v24 }
  0xbe   : > { %719 = vst [vmem:[%s1135_s9 + $0x28] sm:$0xff] %v677_v26 }
  0xc0   : > { %v624_v27 = vpop.f32.mrf.mxu2 }
  0xc1   : > { %v698_v28 = vadd.f32 %v1130_v46, %v624_v27  ;;  %v657_v29 = vpop.f32.mrf.mxu3 }
  0xc2   : > { %v594_v30 = vpop.f32.mrf.mxu1  ;;  %v709_v31 = vadd.f32 %v1130_v46, %v657_v29 }
  0xc3   : > { %740 = vst [vmem:[%s1135_s9 + $0xd0] sm:$0xff] %v698_v28  ;;  %v688_v32 = vadd.f32 %v1130_v46, %v594_v30  ;;  %v564_v33 = vpop.f32.mrf.mxu0 }
  0xc4   : > { %751 = vst [vmem:[%s1135_s9 + $0x128] sm:$0xff] %v709_v31  ;;  %v678_v34 = vadd.f32 %v1130_v46, %v564_v33 }
  0xc5   : > { %730 = vst [vmem:[%s1135_s9 + $0x80] sm:$0xff] %v688_v32 }
  0xc6   : > { %720 = vst [vmem:[%s1135_s9 + $0x30] sm:$0xff] %v678_v34 }
  0xc8   : > { %v627_v35 = vpop.f32.mrf.mxu2 }
  0xc9   : > { %v699_v36 = vadd.f32 %v1130_v46, %v627_v35  ;;  %v660_v37 = vpop.f32.mrf.mxu3 }
  0xca   : > { %v597_v38 = vpop.f32.mrf.mxu1  ;;  %v710_v39 = vadd.f32 %v1130_v46, %v660_v37 }
  0xcb   : > { %741 = vst [vmem:[%s1135_s9 + $0xd8] sm:$0xff] %v699_v36  ;;  %v689_v40 = vadd.f32 %v1130_v46, %v597_v38  ;;  %v567_v41 = vpop.f32.mrf.mxu0 }
  0xcc   : > { %752 = vst [vmem:[%s1135_s9 + $0x130] sm:$0xff] %v710_v39  ;;  %v679_v42 = vadd.f32 %v1130_v46, %v567_v41 }
  0xcd   : > { %731 = vst [vmem:[%s1135_s9 + $0x88] sm:$0xff] %v689_v40 }
  0xce   : > { %721 = vst [vmem:[%s1135_s9 + $0x38] sm:$0xff] %v679_v42 }
  0xd0   : > { %v630_v43 = vpop.f32.mrf.mxu2 }
  0xd1   : > { %v700_v44 = vadd.f32 %v1130_v46, %v630_v43  ;;  %v663_v45 = vpop.f32.mrf.mxu3 }
  0xd2   : > { %v600_v47 = vpop.f32.mrf.mxu1  ;;  %v711_v48 = vadd.f32 %v1130_v46, %v663_v45 }
  0xd3   : > { %742 = vst [vmem:[%s1135_s9 + $0xe0] sm:$0xff] %v700_v44  ;;  %v690_v49 = vadd.f32 %v1130_v46, %v600_v47  ;;  %v570_v50 = vpop.f32.mrf.mxu0 }
  0xd4   : > { %753 = vst [vmem:[%s1135_s9 + $0x138] sm:$0xff] %v711_v48  ;;  %v680_v51 = vadd.f32 %v1130_v46, %v570_v50 }
  0xd5   : > { %732 = vst [vmem:[%s1135_s9 + $0x90] sm:$0xff] %v690_v49 }
  0xd6   : > { %722 = vst [vmem:[%s1135_s9 + $0x40] sm:$0xff] %v680_v51 }
  0xd8   : > { %v633_v52 = vpop.f32.mrf.mxu2 }
  0xd9   : > { %v701_v53 = vadd.f32 %v1130_v46, %v633_v52  ;;  %v666_v54 = vpop.f32.mrf.mxu3 }
  0xda   : > { %v603_v55 = vpop.f32.mrf.mxu1  ;;  %v712_v56 = vadd.f32 %v1130_v46, %v666_v54 }
  0xdb   : > { %743 = vst [vmem:[%s1135_s9 + $0xe8] sm:$0xff] %v701_v53  ;;  %v691_v57 = vadd.f32 %v1130_v46, %v603_v55  ;;  %v573_v58 = vpop.f32.mrf.mxu0 }
  0xdc   : > { %754 = vst [vmem:[%s1135_s9 + $0x140] sm:$0xff] %v712_v56  ;;  %v681_v59 = vadd.f32 %v1130_v46, %v573_v58 }
  0xdd   : > { %733 = vst [vmem:[%s1135_s9 + $0x98] sm:$0xff] %v691_v57 }
  0xde   : > { %723 = vst [vmem:[%s1135_s9 + $0x48] sm:$0xff] %v681_v59 }
  0xe0   : > { %v636_v60 = vpop.f32.mrf.mxu2 }
  0xe1   : > { %v702_v61 = vadd.f32 %v1130_v46, %v636_v60  ;;  %v669_v62 = vpop.f32.mrf.mxu3 }
  0xe2   : > { %v606_v63 = vpop.f32.mrf.mxu1  ;;  %v713_v0 = vadd.f32 %v1130_v46, %v669_v62 }
  0xe3   : > { %744 = vst [vmem:[%s1135_s9 + $0xf0] sm:$0xff] %v702_v61  ;;  %v692_v1 = vadd.f32 %v1130_v46, %v606_v63 }
  0xe4   : > { %755 = vst [vmem:[%s1135_s9 + $0x148] sm:$0xff] %v713_v0 }
  0xe5   : > { %734 = vst [vmem:[%s1135_s9 + $0xa0] sm:$0xff] %v692_v1 }
  0xe8   : > { %v639_v2 = vpop.f32.mrf.mxu2 }
  0xe9   : > { %v703_v3 = vadd.f32 %v1130_v46, %v639_v2 }
  0xeb   : > { %745 = vst [vmem:[%s1135_s9 + $0xf8] sm:$0xff] %v703_v3 }
  0xec PF: > { %s13_s14 = sadd.s32 1, %s982_s14   ;;  %s1234_s12 = smov %s978_s13 }
  0xed   : > { %p10_p6 = scmp.ge.s32.totalorder %s13_s14, 4   ;;  %s1235_s13 = smov %s1237_s15 }
  0xef   :  { %12 = sbr.rel (!%p10_p6) target bundleno = 2 (0x2), region = 72 }

</bundles_post_ra>
